<compile_context>
chip_gen: v6e
topology: v6e:2x2x1
jax: 0.10.0
libtpu: 0.0.40
codegen_flags: <defaults>
</compile_context>

<pallas_src>
import jax
import jax.numpy as jnp
from jax import lax
from jax.experimental import pallas as pl
from jax.experimental.pallas import tpu as pltpu

BN_EPS = 1e-5
LN_EPS = 1e-5
L2_EPS = 1e-12  # F.normalize default eps


# ----------------------------------------------------------------------------
# Pallas kernel: fused embedding head
#   y   = f @ W + b                       (Linear 2048 -> 512, MXU, bf16 in / f32 acc)
#   y   = LayerNorm(y; gamma, beta)       (reduction over embedding dim, f32)
#   out = y * rsqrt(max(sum(y*y), eps^2)) (== y / max(||y||_2, eps), F.normalize)
# ----------------------------------------------------------------------------
def head_kernel(f_ref, w_ref, b_ref, g_ref, beta_ref, o_ref):
    # bf16 operands feed the MXU; accumulate in f32.
    y = jnp.dot(f_ref[...], w_ref[...],
                preferred_element_type=jnp.float32) + b_ref[...]      # (TB, 512) f32
    # LayerNorm over the embedding dim (f32 throughout).
    mu = jnp.mean(y, axis=-1, keepdims=True)
    yc = y - mu
    var = jnp.mean(yc * yc, axis=-1, keepdims=True)
    yn = yc * lax.rsqrt(var + LN_EPS) * g_ref[...] + beta_ref[...]
    # L2 normalize each row: rsqrt on the clamped squared norm (EUP slot),
    # then a cheap vmul instead of sqrt + divide.
    ssq = jnp.sum(yn * yn, axis=-1, keepdims=True)
    o_ref[...] = yn * lax.rsqrt(jnp.maximum(ssq, L2_EPS * L2_EPS))


def embedding_head(features, w, b, gamma, beta, *, tb=None):
    """features: (B, 2048) f32; w: (2048, 512); returns (B, 512) unit-L2 rows."""
    B, NF = features.shape
    E = w.shape[1]

    # bf16 only where it saves HBM bytes (weight + feature DMA); math stays f32.
    f_bf16 = features.astype(jnp.bfloat16)
    w_bf16 = w.astype(jnp.bfloat16)

    # Batch tile: sublane-aligned (multiple of 8), capped at 512 rows so
    # (features tile + resident W + out) fits comfortably in v7x's 64 MiB VMEM
    # with double-buffering.
    if tb is None:
        tb = min(512, ((B + 7) // 8) * 8)
    tb = max(8, ((tb + 7) // 8) * 8)
    b_pad = ((B + tb - 1) // tb) * tb
    if b_pad != B:
        # Padded rows are per-row independent (LayerNorm / L2 reduce over last dim
        # only) and are sliced away below.
        f_bf16 = jnp.pad(f_bf16, ((0, b_pad - B), (0, 0)))
    grid = (b_pad // tb,)

    cost = pl.CostEstimate(
        flops=2 * b_pad * NF * E,
        transcendentals=2 * b_pad,                       # rsqrt x2 per row
        bytes_accessed=(b_pad * NF * 2) + (NF * E * 2) + (b_pad * E * 4) + 3 * E * 4,
    )

    out = pl.pallas_call(
        head_kernel,
        out_shape=jax.ShapeDtypeStruct((b_pad, E), jnp.float32),
        grid=grid,
        in_specs=[
            pl.BlockSpec((tb, NF), lambda i: (i, 0)),     # features: tiled over batch
            pl.BlockSpec((NF, E), lambda i: (0, 0)),      # W: VMEM-resident across steps
            pl.BlockSpec((1, E), lambda i: (0, 0)),       # bias
            pl.BlockSpec((1, E), lambda i: (0, 0)),       # LayerNorm gamma
            pl.BlockSpec((1, E), lambda i: (0, 0)),       # LayerNorm beta
        ],
        out_specs=pl.BlockSpec((tb, E), lambda i: (i, 0)),
        compiler_params=pltpu.CompilerParams(
            dimension_semantics=("parallel",)),           # v7x: shard batch over 2 TCs
        cost_estimate=cost,
    )(f_bf16, w_bf16, b.reshape(1, E), gamma.reshape(1, E), beta.reshape(1, E))
    return out[:B]


# ----------------------------------------------------------------------------
# ResNet50 backbone (timm resnet50, num_classes=0 -> pooled 2048-d features).
# Convolutions / maxpool stay in plain JAX (glue): the backbone is an external
# timm dependency; the module-specific compute is the embedding head above.
# TODO(synk): backbone convs remain lax.conv_general_dilated in NCHW; for real
#             end-to-end speed transpose to NHWC and/or express the 1x1 convs as
#             tiled bf16 Pallas matmuls — the head is <1% of total latency.
# ----------------------------------------------------------------------------
def _conv_init(key, o, i, kh, kw):
    fan_in = i * kh * kw
    std = (2.0 / fan_in) ** 0.5
    return std * jax.random.normal(key, (o, i, kh, kw), jnp.float32)


def conv2d(x, w, stride=1, padding=0):
    return lax.conv_general_dilated(
        x, w, window_strides=(stride, stride),
        padding=[(padding, padding), (padding, padding)],
        dimension_numbers=('NCHW', 'OIHW', 'NCHW'))


def bn_params(c):
    # fresh BatchNorm: gamma=1, beta=0, running_mean=0, running_var=1
    return (jnp.ones((c,), jnp.float32), jnp.zeros((c,), jnp.float32),
            jnp.zeros((c,), jnp.float32), jnp.ones((c,), jnp.float32))


def batchnorm(x, p):
    gamma, beta, mean, var = p
    scale = gamma / jnp.sqrt(var + BN_EPS)
    shift = beta - mean * scale
    return x * scale[None, :, None, None] + shift[None, :, None, None]


def maxpool3x3s2(x):
    return lax.reduce_window(x, -jnp.inf, lax.max,
                             (1, 1, 3, 3), (1, 1, 2, 2),
                             padding=((0, 0), (0, 0), (1, 1), (1, 1)))


def make_resnet50_params(key):
    keys = iter(jax.random.split(key, 64))
    params = {
        'stem_conv': _conv_init(next(keys), 64, 3, 7, 7),
        'stem_bn': bn_params(64),
    }
    stage_cfg = [(64, 3, 1), (128, 4, 2), (256, 6, 2), (512, 3, 2)]
    in_c = 64
    stages = []
    for planes, nblocks, stride in stage_cfg:
        blocks = []
        for bi in range(nblocks):
            s = stride if bi == 0 else 1
            blk = {
                'conv1': _conv_init(next(keys), planes, in_c, 1, 1),
                'bn1': bn_params(planes),
                'conv2': _conv_init(next(keys), planes, planes, 3, 3),
                'bn2': bn_params(planes),
                'conv3': _conv_init(next(keys), planes * 4, planes, 1, 1),
                'bn3': bn_params(planes * 4),
                'stride': s,
            }
            if s != 1 or in_c != planes * 4:
                blk['down_conv'] = _conv_init(next(keys), planes * 4, in_c, 1, 1)
                blk['down_bn'] = bn_params(planes * 4)
            blocks.append(blk)
            in_c = planes * 4
        stages.append(blocks)
    params['stages'] = stages
    return params


def bottleneck(x, blk):
    out = jax.nn.relu(batchnorm(conv2d(x, blk['conv1']), blk['bn1']))
    out = jax.nn.relu(batchnorm(
        conv2d(out, blk['conv2'], stride=blk['stride'], padding=1), blk['bn2']))
    out = batchnorm(conv2d(out, blk['conv3']), blk['bn3'])
    if 'down_conv' in blk:
        sc = batchnorm(conv2d(x, blk['down_conv'], stride=blk['stride']),
                       blk['down_bn'])
    else:
        sc = x
    return jax.nn.relu(out + sc)


def resnet50_features(x, params):
    x = jax.nn.relu(batchnorm(conv2d(x, params['stem_conv'], stride=2, padding=3),
                              params['stem_bn']))
    x = maxpool3x3s2(x)
    for blocks in params['stages']:
        for blk in blocks:
            x = bottleneck(x, blk)
    return jnp.mean(x, axis=(2, 3))          # global avg pool -> (B, 2048)


def make_head_params(key, num_features=2048, embedding_dim=512):
    # xavier_uniform_ on the Linear weight, zeros bias, default LayerNorm affine.
    limit = (6.0 / (num_features + embedding_dim)) ** 0.5
    w = jax.random.uniform(key, (num_features, embedding_dim), jnp.float32,
                           minval=-limit, maxval=limit)
    b = jnp.zeros((embedding_dim,), jnp.float32)
    gamma = jnp.ones((embedding_dim,), jnp.float32)
    beta = jnp.zeros((embedding_dim,), jnp.float32)
    return w, b, gamma, beta


def distortion_face_net(x, backbone_params, head_params):
    feats = resnet50_features(x, backbone_params)            # (B, 2048) f32
    w, b, gamma, beta = head_params
    return embedding_head(feats, w, b, gamma, beta)          # (B, 512), unit L2 rows


if __name__ == "__main__":
    key = jax.random.PRNGKey(0)
    k_x, k_bb, k_head = jax.random.split(key, 3)

    # small image batch consistent with an NCHW RGB face crop
    x = jax.random.normal(k_x, (2, 3, 32, 32), jnp.float32)

    backbone_params = make_resnet50_params(k_bb)
    head_params = make_head_params(k_head)

    out = distortion_face_net(x, backbone_params, head_params)
    out = jax.block_until_ready(out)

    assert out.shape == (2, 512)
    assert bool(jnp.all(jnp.isfinite(out)))
    # rows are L2-normalized
    norms = jnp.linalg.norm(out, axis=1)
    assert bool(jnp.all(jnp.abs(norms - 1.0) < 1e-3))

    # cross-check the fused head against a pure-JAX f32 reference (bf16 operands
    # change the embedding at the ~1e-3 level; L2-normalized rows stay close)
    feats = resnet50_features(x, backbone_params)
    w, b, gamma, beta = head_params
    y_ref = feats @ w + b
    mu = y_ref.mean(-1, keepdims=True)
    var = ((y_ref - mu) ** 2).mean(-1, keepdims=True)
    y_ref = (y_ref - mu) / jnp.sqrt(var + LN_EPS) * gamma + beta
    y_ref = y_ref / jnp.maximum(jnp.linalg.norm(y_ref, axis=-1, keepdims=True), L2_EPS)
    assert bool(jnp.max(jnp.abs(out - y_ref)) < 5e-2)

    print("KERNEL_OK")
</pallas_src>

<mosaic_0001>
module attributes {stable_mosaic.version = 11 : i64} {
  func.func @head_kernel(%arg0: i32, %arg1: memref<8x2048xbf16, #tpu.memory_space<vmem>>, %arg2: memref<2048x512xbf16, #tpu.memory_space<vmem>>, %arg3: memref<1x512xf32, #tpu.memory_space<vmem>>, %arg4: memref<1x512xf32, #tpu.memory_space<vmem>>, %arg5: memref<1x512xf32, #tpu.memory_space<vmem>>, %arg6: memref<8x512xf32, #tpu.memory_space<vmem>>) attributes {dimension_semantics = [#tpu.dimension_semantics<parallel>], iteration_bounds = array<i64: 1>, scalar_prefetch = 0 : i64, scratch_operands = 0 : i64, tpu.core_type = #tpu.core_type<tc>, window_params = [{transform_indices = @transform_0, window_bounds = array<i64: 8, 2048>}, {pipeline_mode = #tpu.pipeline_mode<synchronous>, transform_indices = @transform_1, window_bounds = array<i64: 2048, 512>}, {pipeline_mode = #tpu.pipeline_mode<synchronous>, transform_indices = @transform_2, window_bounds = array<i64: 1, 512>}, {pipeline_mode = #tpu.pipeline_mode<synchronous>, transform_indices = @transform_3, window_bounds = array<i64: 1, 512>}, {pipeline_mode = #tpu.pipeline_mode<synchronous>, transform_indices = @transform_4, window_bounds = array<i64: 1, 512>}, {transform_indices = @transform_5, window_bounds = array<i64: 8, 512>}]} {
    %c0 = arith.constant 0 : index
    %c0_0 = arith.constant 0 : index
    %0 = vector.load %arg1[%c0, %c0_0] : memref<8x2048xbf16, #tpu.memory_space<vmem>>, vector<8x2048xbf16>
    %c0_1 = arith.constant 0 : index
    %c0_2 = arith.constant 0 : index
    %1 = vector.load %arg2[%c0_1, %c0_2] : memref<2048x512xbf16, #tpu.memory_space<vmem>>, vector<2048x512xbf16>
    %cst = arith.constant dense<0.000000e+00> : vector<8x512xf32>
    %2 = tpu.matmul %0, %1, %cst {dimension_numbers = #tpu.dot_dimension_numbers<[1], [0], [0], [1], [0, 0, 1, 1], [], []>} : vector<8x2048xbf16>, vector<2048x512xbf16>, vector<8x512xf32> -> vector<8x512xf32>
    %c0_3 = arith.constant 0 : index
    %c0_4 = arith.constant 0 : index
    %3 = vector.load %arg3[%c0_3, %c0_4] : memref<1x512xf32, #tpu.memory_space<vmem>>, vector<1x512xf32>
    %4 = vector.broadcast %3 : vector<1x512xf32> to vector<8x512xf32>
    %5 = arith.addf %2, %4 : vector<8x512xf32>
    %cst_5 = arith.constant dense<0.000000e+00> : vector<8xf32>
    %6 = vector.multi_reduction <add>, %5, %cst_5 [1] : vector<8x512xf32> to vector<8xf32>
    %7 = vector.shape_cast %6 : vector<8xf32> to vector<8x1xf32>
    %cst_6 = arith.constant 5.120000e+02 : f32
    %8 = vector.broadcast %cst_6 : f32 to vector<8x1xf32>
    %9 = arith.divf %7, %8 : vector<8x1xf32>
    %10 = vector.broadcast %9 : vector<8x1xf32> to vector<8x512xf32>
    %11 = arith.subf %5, %10 : vector<8x512xf32>
    %12 = arith.mulf %11, %11 : vector<8x512xf32>
    %cst_7 = arith.constant dense<0.000000e+00> : vector<8xf32>
    %13 = vector.multi_reduction <add>, %12, %cst_7 [1] : vector<8x512xf32> to vector<8xf32>
    %14 = vector.shape_cast %13 : vector<8xf32> to vector<8x1xf32>
    %cst_8 = arith.constant 5.120000e+02 : f32
    %15 = vector.broadcast %cst_8 : f32 to vector<8x1xf32>
    %16 = arith.divf %14, %15 : vector<8x1xf32>
    %cst_9 = arith.constant 9.99999974E-6 : f32
    %17 = vector.broadcast %cst_9 : f32 to vector<8x1xf32>
    %18 = arith.addf %16, %17 : vector<8x1xf32>
    %19 = math.rsqrt %18 : vector<8x1xf32>
    %20 = vector.broadcast %19 : vector<8x1xf32> to vector<8x512xf32>
    %21 = arith.mulf %11, %20 : vector<8x512xf32>
    %c0_10 = arith.constant 0 : index
    %c0_11 = arith.constant 0 : index
    %22 = vector.load %arg4[%c0_10, %c0_11] : memref<1x512xf32, #tpu.memory_space<vmem>>, vector<1x512xf32>
    %23 = vector.broadcast %22 : vector<1x512xf32> to vector<8x512xf32>
    %24 = arith.mulf %21, %23 : vector<8x512xf32>
    %c0_12 = arith.constant 0 : index
    %c0_13 = arith.constant 0 : index
    %25 = vector.load %arg5[%c0_12, %c0_13] : memref<1x512xf32, #tpu.memory_space<vmem>>, vector<1x512xf32>
    %26 = vector.broadcast %25 : vector<1x512xf32> to vector<8x512xf32>
    %27 = arith.addf %24, %26 : vector<8x512xf32>
    %28 = arith.mulf %27, %27 : vector<8x512xf32>
    %cst_14 = arith.constant dense<0.000000e+00> : vector<8xf32>
    %29 = vector.multi_reduction <add>, %28, %cst_14 [1] : vector<8x512xf32> to vector<8xf32>
    %30 = vector.shape_cast %29 : vector<8xf32> to vector<8x1xf32>
    %cst_15 = arith.constant 1.000000e-24 : f32
    %31 = vector.broadcast %cst_15 : f32 to vector<8x1xf32>
    %32 = arith.maximumf %30, %31 : vector<8x1xf32>
    %33 = math.rsqrt %32 : vector<8x1xf32>
    %34 = vector.broadcast %33 : vector<8x1xf32> to vector<8x512xf32>
    %35 = arith.mulf %27, %34 : vector<8x512xf32>
    %c0_16 = arith.constant 0 : index
    %c0_17 = arith.constant 0 : index
    %36 = vector.load %arg6[%c0_16, %c0_17] : memref<8x512xf32, #tpu.memory_space<vmem>>, vector<8x512xf32>
    tpu.vector_store %arg6[%c0_16, %c0_17], %35 {strides = array<i32>} : memref<8x512xf32, #tpu.memory_space<vmem>>, vector<8x512xf32>,
    return
  }
  func.func @transform_0(%arg0: i32) -> (i32, i32) {
    %c0_i32 = arith.constant 0 : i32
    %c0_i32_0 = arith.constant 0 : i32
    return %arg0, %c0_i32 : i32, i32
  }
  func.func @transform_1(%arg0: i32) -> (i32, i32) {
    %c0_i32 = arith.constant 0 : i32
    %c0_i32_0 = arith.constant 0 : i32
    %c0_i32_1 = arith.constant 0 : i32
    return %c0_i32, %c0_i32_0 : i32, i32
  }
  func.func @transform_2(%arg0: i32) -> (i32, i32) {
    %c0_i32 = arith.constant 0 : i32
    %c0_i32_0 = arith.constant 0 : i32
    %c0_i32_1 = arith.constant 0 : i32
    return %c0_i32, %c0_i32_0 : i32, i32
  }
  func.func @transform_3(%arg0: i32) -> (i32, i32) {
    %c0_i32 = arith.constant 0 : i32
    %c0_i32_0 = arith.constant 0 : i32
    %c0_i32_1 = arith.constant 0 : i32
    return %c0_i32, %c0_i32_0 : i32, i32
  }
  func.func @transform_4(%arg0: i32) -> (i32, i32) {
    %c0_i32 = arith.constant 0 : i32
    %c0_i32_0 = arith.constant 0 : i32
    %c0_i32_1 = arith.constant 0 : i32
    return %c0_i32, %c0_i32_0 : i32, i32
  }
  func.func @transform_5(%arg0: i32) -> (i32, i32) {
    %c0_i32 = arith.constant 0 : i32
    %c0_i32_0 = arith.constant 0 : i32
    return %arg0, %c0_i32 : i32, i32
  }
}

</mosaic_0001>

<bundles_post_ra>
// kernel: tpu_custom_call.1
= control target key start
LH: loop header
LB: loop body
LE: loop exit
PB: predicated region body
PF: predicated region fallthrough
CT: control target
= control target key end

     0   :  { %10 = vsyncpa [#allocation3], 0  ;;  %s5671_s0 = inlined_call_operand.hbm [shape: bf16[8,2048], index: 0, kind: input, shape index: {}]   ;;  %s5672_s1 = inlined_call_operand.hbm [shape: bf16[2048,512], index: 1, kind: input, shape index: {}]   ;;  %s5673_s2 = inlined_call_operand.hbm [shape: f32[1,512], index: 2, kind: input, shape index: {}]   ;;  %s5674_s3 = inlined_call_operand.hbm [shape: f32[1,512], index: 3, kind: input, shape index: {}]   ;;  %s5675_s4 = inlined_call_operand.hbm [shape: f32[1,512], index: 4, kind: input, shape index: {}]   ;;  %s5676_s5 = inlined_call_operand.hbm [shape: f32[8,512], index: 5, kind: output, shape index: {}]  }
   0x1   :  { %11 = vsyncpa [#allocation6], 0 }
   0x2   :  { %12 = vsyncpa [#allocation9], 0 }
   0x3   :  { %13 = vsyncpa [#allocation4], 0  ;;  %s5463_s18 = smov [#allocation5]  }
   0x4   :  { %s29_s19 = sshll.u32 %s5463_s18, 4  ;;  %s30_s19 = int_to_ptr.vmem [resolvable:$true] %s29_s19 }
   0x5   :  { %s5343_s20 = scalar_lea.vmem %s30_s19, 65536  ;;  %p5348_p1 = scmp.lt.s32.totalorder %s30_s19, %s30_s19 }
   0x6   :  { %p5344_p0 = scmp.ne.s32.totalorder %s30_s19, %s5343_s20  ;;  %p5349_p2 = scmp.lt.s32.totalorder %s5343_s20, %s5343_s20 }
   0x8   :  { %p5350_p3 = por %p5349_p2, %p5348_p1 }
   0xa   :  { %p5351_p4 = pnand %p5350_p3, %p5344_p0 }
   0xc   :  { %5354 = shalt.err (!%p5351_p4)
}
   0xd   :  { %s5464_s21 = smov 256   ;;  %s5465_s22 = smov 16  }
   0xe   :  { %35 = dma.hbm_to_vmem [thread:$0]  %s5672_s1, 65536, %s30_s19, [#allocation6], %s5464_s21, %s5464_s21, %s5465_s22  }
   0xf   :  { %s5466_s25 = smov [#allocation8]   ;;  %s5467_s27 = smov [#allocation2]  }
  0x10   :  { %s52_s26 = sshll.u32 %s5466_s25, 4  ;;  %s20_s28 = sshll.u32 %s5467_s27, 4  ;;  %s53_s26 = int_to_ptr.vmem [resolvable:$true] %s52_s26  ;;  %s21_s28 = int_to_ptr.vmem [resolvable:$true] %s20_s28 }
  0x11   :  { %s5363_s29 = scalar_lea.vmem %s53_s26, 64  ;;  %p5368_p6 = scmp.lt.s32.totalorder %s53_s26, %s53_s26 }
  0x12   :  { %p5364_p5 = scmp.ne.s32.totalorder %s53_s26, %s5363_s29  ;;  %p5369_p7 = scmp.lt.s32.totalorder %s5363_s29, %s5363_s29 }
  0x14   :  { %p5370_p8 = por %p5369_p7, %p5368_p6 }
  0x16   :  { %p5371_p9 = pnand %p5370_p8, %p5364_p5 }
  0x18   :  { %5374 = shalt.err (!%p5371_p9)
}
  0x19   :  { %55 = dma.hbm_to_vmem [thread:$0]  %s5674_s3, 64, %s53_s26, [#allocation9]  }
  0x1a   :  { %s5383_s7 = scalar_lea.vmem %s21_s28, 1024  ;;  %p5388_p11 = scmp.lt.s32.totalorder %s21_s28, %s21_s28 }
  0x1b   :  { %p5384_p10 = scmp.ne.s32.totalorder %s21_s28, %s5383_s7  ;;  %p5389_p12 = scmp.lt.s32.totalorder %s5383_s7, %s5383_s7 }
  0x1d   :  { %p5390_p13 = por %p5389_p12, %p5388_p11 }
  0x1f   :  { %p5391_p0 = pnand %p5390_p13, %p5384_p10 }
  0x21   :  { %5394 = shalt.err (!%p5391_p0)
}
  0x22   :  { %23 = dma.hbm_to_vmem [thread:$0]  %s5671_s0, 1024, %s21_s28, [#allocation3]  }
  0x23   :  { %s5468_s9 = smov [#allocation7]   ;;  %s5469_s11 = smov [#allocation10]  }
  0x24   :  { %s42_s10 = sshll.u32 %s5468_s9, 4  ;;  %s62_s12 = sshll.u32 %s5469_s11, 4  ;;  %s43_s10 = int_to_ptr.vmem [resolvable:$true] %s42_s10  ;;  %s63_s12 = int_to_ptr.vmem [resolvable:$true] %s62_s12 }
  0x25   :  { %s5403_s13 = scalar_lea.vmem %s43_s10, 64  ;;  %p5408_p2 = scmp.lt.s32.totalorder %s43_s10, %s43_s10 }
  0x26   :  { %p5404_p1 = scmp.ne.s32.totalorder %s43_s10, %s5403_s13  ;;  %p5409_p3 = scmp.lt.s32.totalorder %s5403_s13, %s5403_s13 }
  0x28   :  { %p5410_p4 = por %p5409_p3, %p5408_p2 }
  0x2a   :  { %p5411_p5 = pnand %p5410_p4, %p5404_p1 }
  0x2c   :  { %5414 = shalt.err (!%p5411_p5)
}
  0x2d   :  { %45 = dma.hbm_to_vmem [thread:$0]  %s5673_s2, 64, %s43_s10, [#allocation6]  }
  0x2e   :  { %s5423_s15 = scalar_lea.vmem %s63_s12, 64  ;;  %p5428_p7 = scmp.lt.s32.totalorder %s63_s12, %s63_s12 }
  0x2f   :  { %p5424_p6 = scmp.ne.s32.totalorder %s63_s12, %s5423_s15  ;;  %p5429_p8 = scmp.lt.s32.totalorder %s5423_s15, %s5423_s15 }
  0x31   :  { %p5430_p9 = por %p5429_p8, %p5428_p7 }
  0x33   :  { %p5431_p10 = pnand %p5430_p9, %p5424_p6 }
  0x35   :  { %5434 = shalt.err (!%p5431_p10)
}
  0x36   :  { %65 = dma.hbm_to_vmem [thread:$0]  %s5675_s4, 64, %s63_s12, [#allocation9]  }
  0x37   :  { %5455 = dma.done.wait [#allocation3], 1024  }
  0x38   :  { %5456 = vsyncadd [#allocation3], 4294966272 }
  0x39   :  { %5457 = dma.done.wait [#allocation6], 65600  }
  0x3a   :  { %5458 = vsyncadd [#allocation6], 4294901696 }
  0x3b   :  { %5459 = dma.done.wait [#allocation9], 128  }
  0x3c   :  { %5460 = vsyncadd [#allocation9], 4294967168  ;;  %v4546_v0 = vld [vmem:[#allocation5 + $0xe4] ss:$16 sps:$4 sm:$0xff]   ;;  %v4550_v2 = vld [vmem:[#allocation5 + $0xe0] ss:$16 sps:$4 sm:$0xff]  }
  0x3d   :  { %v4548_v1 = vld [vmem:[#allocation5 + $0x2e4] ss:$16 sps:$4 sm:$0xff]   ;;  %3239 = vmatprep.subr.bf16.mxu0 %v4546_v0  ;;  %v4551_v3 = vld [vmem:[#allocation5 + $0x2e0] ss:$16 sps:$4 sm:$0xff]   ;;  %v82_v48 = vld [vmem:[#allocation2 + $0x8] sm:$0xff]  ;;  %s5470_s2 = smov [#allocation11]  }
  0x3e   :  { %3280 = vmatprep.subr.bf16.mxu1 %v4548_v1  ;;  %v4552_v4 = vld [vmem:[#allocation5 + $0xc4] ss:$16 sps:$4 sm:$0xff]   ;;  %3240 = vmatpush1.bf16.msra.mxu0 %v4550_v2  ;;  %v4556_v6 = vld [vmem:[#allocation5 + $0xc0] ss:$16 sps:$4 sm:$0xff]   ;;  %v5518_v51 = vcombine.high %v82_v48, %v82_v48  ;;  %s3999_s4 = sshll.u32 %s5470_s2, 4  ;;  %s4000_s4 = int_to_ptr.vmem [resolvable:$true] %s3999_s4 }
  0x3f   :  { %3281 = vmatpush1.bf16.msra.mxu1 %v4551_v3  ;;  %v4554_v5 = vld [vmem:[#allocation5 + $0x2c4] ss:$16 sps:$4 sm:$0xff]   ;;  %3241 = vmatprep.subr.bf16.mxu0 %v4552_v4  ;;  %v4557_v7 = vld [vmem:[#allocation5 + $0x2c0] ss:$16 sps:$4 sm:$0xff]   ;;  %s5435_s17 = scalar_lea.vmem %s4000_s4, 512  ;;  %p5440_p12 = scmp.lt.s32.totalorder %s4000_s4, %s4000_s4 }
  0x40   :  { %3282 = vmatprep.subr.bf16.mxu1 %v4554_v5  ;;  %v4558_v8 = vld [vmem:[#allocation5 + $0xa4] ss:$16 sps:$4 sm:$0xff]   ;;  %v4562_v10 = vld [vmem:[#allocation5 + $0xa0] ss:$16 sps:$4 sm:$0xff]   ;;  %3312 = vmatprep.mubr.bf16.mxu1 %v5518_v51  ;;  %p5436_p11 = scmp.ne.s32.totalorder %s4000_s4, %s5435_s17  ;;  %p5441_p13 = scmp.lt.s32.totalorder %s5435_s17, %s5435_s17 }
  0x41   :  { %v4560_v9 = vld [vmem:[#allocation5 + $0x2a4] ss:$16 sps:$4 sm:$0xff]   ;;  %v4563_v11 = vld [vmem:[#allocation5 + $0x2a0] ss:$16 sps:$4 sm:$0xff]  }
  0x42   :  { %3242 = vmatpush1.bf16.msra.mxu0 %v4556_v6  ;;  %v4564_v12 = vld [vmem:[#allocation5 + $0x84] ss:$16 sps:$4 sm:$0xff]   ;;  %v4568_v14 = vld [vmem:[#allocation5 + $0x80] ss:$16 sps:$4 sm:$0xff]   ;;  %p5442_p0 = por %p5441_p13, %p5440_p12 }
  0x43   :  { %3283 = vmatpush1.bf16.msra.mxu1 %v4557_v7  ;;  %3243 = vmatprep.subr.bf16.mxu0 %v4558_v8  ;;  %v4566_v13 = vld [vmem:[#allocation5 + $0x284] ss:$16 sps:$4 sm:$0xff]   ;;  %v4569_v15 = vld [vmem:[#allocation5 + $0x280] ss:$16 sps:$4 sm:$0xff]   ;;  %v5524_v7 = vcombine.low %v82_v48, %v82_v48 }
  0x44   :  { %3284 = vmatprep.subr.bf16.mxu1 %v4560_v9  ;;  %v4570_v16 = vld [vmem:[#allocation5 + $0x64] ss:$16 sps:$4 sm:$0xff]   ;;  %v4574_v18 = vld [vmem:[#allocation5 + $0x60] ss:$16 sps:$4 sm:$0xff]   ;;  %p5443_p1 = pnand %p5442_p0, %p5436_p11 }
  0x45   :  { %v4572_v17 = vld [vmem:[#allocation5 + $0x264] ss:$16 sps:$4 sm:$0xff]   ;;  %v4575_v19 = vld [vmem:[#allocation5 + $0x260] ss:$16 sps:$4 sm:$0xff]  }
  0x46   :  { %3244 = vmatpush1.bf16.msra.mxu0 %v4562_v10  ;;  %v4576_v20 = vld [vmem:[#allocation5 + $0x44] ss:$16 sps:$4 sm:$0xff]   ;;  %v4580_v22 = vld [vmem:[#allocation5 + $0x40] ss:$16 sps:$4 sm:$0xff]  }
  0x47   :  { %3285 = vmatpush1.bf16.msra.mxu1 %v4563_v11  ;;  %3245 = vmatprep.subr.bf16.mxu0 %v4564_v12  ;;  %v4578_v21 = vld [vmem:[#allocation5 + $0x244] ss:$16 sps:$4 sm:$0xff]   ;;  %v4581_v23 = vld [vmem:[#allocation5 + $0x240] ss:$16 sps:$4 sm:$0xff]  }
  0x48   :  { %3286 = vmatprep.subr.bf16.mxu1 %v4566_v13  ;;  %v4582_v24 = vld [vmem:[#allocation5 + $0x24] ss:$16 sps:$4 sm:$0xff]   ;;  %v4586_v26 = vld [vmem:[#allocation5 + $0x20] ss:$16 sps:$4 sm:$0xff]  }
  0x49   :  { %v4584_v25 = vld [vmem:[#allocation5 + $0x224] ss:$16 sps:$4 sm:$0xff]   ;;  %v4587_v27 = vld [vmem:[#allocation5 + $0x220] ss:$16 sps:$4 sm:$0xff]  }
  0x4a   :  { %3246 = vmatpush1.bf16.msra.mxu0 %v4568_v14  ;;  %v4588_v28 = vld [vmem:[#allocation5 + $0x4] ss:$16 sps:$4 sm:$0xff]   ;;  %v4592_v30 = vld [vmem:[#allocation5] ss:$16 sps:$4 sm:$0xff]  }
  0x4b   :  { %3287 = vmatpush1.bf16.msra.mxu1 %v4569_v15  ;;  %3247 = vmatprep.subr.bf16.mxu0 %v4570_v16  ;;  %v4590_v29 = vld [vmem:[#allocation5 + $0x204] ss:$16 sps:$4 sm:$0xff]   ;;  %v4593_v31 = vld [vmem:[#allocation5 + $0x200] ss:$16 sps:$4 sm:$0xff]  }
  0x4c   :  { %3288 = vmatprep.subr.bf16.mxu1 %v4572_v17  ;;  %v4594_v32 = vld [vmem:[#allocation5 + $0x1e4] ss:$16 sps:$4 sm:$0xff]   ;;  %v4598_v34 = vld [vmem:[#allocation5 + $0x1e0] ss:$16 sps:$4 sm:$0xff]  }
  0x4d   :  { %v4596_v33 = vld [vmem:[#allocation5 + $0x3e4] ss:$16 sps:$4 sm:$0xff]   ;;  %v4599_v35 = vld [vmem:[#allocation5 + $0x3e0] ss:$16 sps:$4 sm:$0xff]  }
  0x4e   :  { %3248 = vmatpush1.bf16.msra.mxu0 %v4574_v18  ;;  %v4600_v36 = vld [vmem:[#allocation5 + $0x1c4] ss:$16 sps:$4 sm:$0xff]   ;;  %v4604_v38 = vld [vmem:[#allocation5 + $0x1c0] ss:$16 sps:$4 sm:$0xff]  }
  0x4f   :  { %3289 = vmatpush1.bf16.msra.mxu1 %v4575_v19  ;;  %3249 = vmatprep.subr.bf16.mxu0 %v4576_v20  ;;  %v4602_v37 = vld [vmem:[#allocation5 + $0x3c4] ss:$16 sps:$4 sm:$0xff]   ;;  %v4605_v39 = vld [vmem:[#allocation5 + $0x3c0] ss:$16 sps:$4 sm:$0xff]  }
  0x50   :  { %3290 = vmatprep.subr.bf16.mxu1 %v4578_v21  ;;  %v4606_v40 = vld [vmem:[#allocation5 + $0x1a4] ss:$16 sps:$4 sm:$0xff]   ;;  %v4610_v42 = vld [vmem:[#allocation5 + $0x1a0] ss:$16 sps:$4 sm:$0xff]  }
  0x51   :  { %v4608_v41 = vld [vmem:[#allocation5 + $0x3a4] ss:$16 sps:$4 sm:$0xff]   ;;  %v4611_v43 = vld [vmem:[#allocation5 + $0x3a0] ss:$16 sps:$4 sm:$0xff]  }
  0x52   :  { %3250 = vmatpush1.bf16.msra.mxu0 %v4580_v22  ;;  %v4612_v44 = vld [vmem:[#allocation5 + $0x184] ss:$16 sps:$4 sm:$0xff]   ;;  %v4616_v49 = vld [vmem:[#allocation5 + $0x180] ss:$16 sps:$4 sm:$0xff]  }
  0x53   :  { %3291 = vmatpush1.bf16.msra.mxu1 %v4581_v23  ;;  %3251 = vmatprep.subr.bf16.mxu0 %v4582_v24  ;;  %v4614_v45 = vld [vmem:[#allocation5 + $0x384] ss:$16 sps:$4 sm:$0xff]   ;;  %v4617_v50 = vld [vmem:[#allocation5 + $0x380] ss:$16 sps:$4 sm:$0xff]  }
  0x54   :  { %3292 = vmatprep.subr.bf16.mxu1 %v4584_v25  ;;  %v81_v46 = vld [vmem:[#allocation2] sm:$0xff] }
  0x55   :  { %v5516_v47 = vcombine.high %v81_v46, %v81_v46  ;;  %v4618_v52 = vld [vmem:[#allocation5 + $0x164] ss:$16 sps:$4 sm:$0xff]   ;;  %v4622_v54 = vld [vmem:[#allocation5 + $0x160] ss:$16 sps:$4 sm:$0xff]   ;;  %v5522_v6 = vcombine.low %v81_v46, %v81_v46 }
  0x56   :  { %3252 = vmatpush1.bf16.msra.mxu0 %v4586_v26  ;;  %v4620_v53 = vld [vmem:[#allocation5 + $0x364] ss:$16 sps:$4 sm:$0xff]   ;;  %v4623_v55 = vld [vmem:[#allocation5 + $0x360] ss:$16 sps:$4 sm:$0xff]  }
  0x57   :  { %3293 = vmatpush1.bf16.msra.mxu1 %v4587_v27  ;;  %3253 = vmatprep.subr.bf16.mxu0 %v4588_v28  ;;  %v4624_v56 = vld [vmem:[#allocation5 + $0x144] ss:$16 sps:$4 sm:$0xff]   ;;  %v4628_v58 = vld [vmem:[#allocation5 + $0x140] ss:$16 sps:$4 sm:$0xff]  }
  0x58   :  { %3294 = vmatprep.subr.bf16.mxu1 %v4590_v29  ;;  %3271 = vmatprep.mubr.bf16.mxu0 %v5516_v47  ;;  %v4626_v57 = vld [vmem:[#allocation5 + $0x344] ss:$16 sps:$4 sm:$0xff]   ;;  %v4629_v59 = vld [vmem:[#allocation5 + $0x340] ss:$16 sps:$4 sm:$0xff]  }
  0x59   :  { %v4630_v60 = vld [vmem:[#allocation5 + $0x124] ss:$16 sps:$4 sm:$0xff]   ;;  %v4634_v62 = vld [vmem:[#allocation5 + $0x120] ss:$16 sps:$4 sm:$0xff]  }
  0x5a   :  { %3254 = vmatpush1.bf16.msra.mxu0 %v4592_v30  ;;  %v4632_v61 = vld [vmem:[#allocation5 + $0x324] ss:$16 sps:$4 sm:$0xff]   ;;  %v4635_v63 = vld [vmem:[#allocation5 + $0x320] ss:$16 sps:$4 sm:$0xff]  }
  0x5b   :  { %3295 = vmatpush1.bf16.msra.mxu1 %v4593_v31  ;;  %3255 = vmatprep.subr.bf16.mxu0 %v4594_v32  ;;  %v4636_v0 = vld [vmem:[#allocation5 + $0x104] ss:$16 sps:$4 sm:$0xff]   ;;  %v4640_v2 = vld [vmem:[#allocation5 + $0x100] ss:$16 sps:$4 sm:$0xff]  }
  0x5c   :  { %3296 = vmatprep.subr.bf16.mxu1 %v4596_v33  ;;  %v4638_v1 = vld [vmem:[#allocation5 + $0x304] ss:$16 sps:$4 sm:$0xff]   ;;  %v4641_v3 = vld [vmem:[#allocation5 + $0x300] ss:$16 sps:$4 sm:$0xff]   ;;  %v5530_v33 = vld [vmem:[#allocation2 + $0x18] sm:$0xff] }
  0x5d   :  { %v4648_v4 = vld [vmem:[#allocation5 + $0x4e4] ss:$16 sps:$4 sm:$0xff]   ;;  %v4646_v8 = vld [vmem:[#allocation5 + $0x4e0] ss:$16 sps:$4 sm:$0xff]  }
  0x5e   :  { %3256 = vmatpush2.bf16.msra.mxu0 %v4598_v34  ;;  %v4651_v5 = vld [vmem:[#allocation5 + $0x6e4] ss:$16 sps:$4 sm:$0xff]   ;;  %v4649_v9 = vld [vmem:[#allocation5 + $0x6e0] ss:$16 sps:$4 sm:$0xff]  }
  0x5f   :  { %3297 = vmatpush2.bf16.msra.mxu1 %v4599_v35  ;;  %3257 = vmatprep.subr.bf16.mxu0 %v4600_v36  ;;  %v4654_v10 = vld [vmem:[#allocation5 + $0x4c4] ss:$16 sps:$4 sm:$0xff]   ;;  %v4652_v12 = vld [vmem:[#allocation5 + $0x4c0] ss:$16 sps:$4 sm:$0xff]  }
  0x60   :  { %3298 = vmatprep.subr.bf16.mxu1 %v4602_v37  ;;  %v4657_v11 = vld [vmem:[#allocation5 + $0x6c4] ss:$16 sps:$4 sm:$0xff]   ;;  %v4655_v13 = vld [vmem:[#allocation5 + $0x6c0] ss:$16 sps:$4 sm:$0xff]   ;;  %v5538_v37 = vcombine.high %v5530_v33, %v5530_v33 }
  0x61   :  { %v4660_v14 = vld [vmem:[#allocation5 + $0x4a4] ss:$16 sps:$4 sm:$0xff]   ;;  %v4658_v16 = vld [vmem:[#allocation5 + $0x4a0] ss:$16 sps:$4 sm:$0xff]  }
  0x62   :  { %3258 = vmatpush2.bf16.msra.mxu0 %v4604_v38  ;;  %v4663_v15 = vld [vmem:[#allocation5 + $0x6a4] ss:$16 sps:$4 sm:$0xff]   ;;  %v4661_v17 = vld [vmem:[#allocation5 + $0x6a0] ss:$16 sps:$4 sm:$0xff]  }
  0x63   :  { %3299 = vmatpush2.bf16.msra.mxu1 %v4605_v39  ;;  %3259 = vmatprep.subr.bf16.mxu0 %v4606_v40  ;;  %v4666_v18 = vld [vmem:[#allocation5 + $0x484] ss:$16 sps:$4 sm:$0xff]   ;;  %v4664_v20 = vld [vmem:[#allocation5 + $0x480] ss:$16 sps:$4 sm:$0xff]  }
  0x64   :  { %3300 = vmatprep.subr.bf16.mxu1 %v4608_v41  ;;  %v4669_v19 = vld [vmem:[#allocation5 + $0x684] ss:$16 sps:$4 sm:$0xff]   ;;  %v4667_v21 = vld [vmem:[#allocation5 + $0x680] ss:$16 sps:$4 sm:$0xff]  }
  0x65   :  { %v4672_v22 = vld [vmem:[#allocation5 + $0x464] ss:$16 sps:$4 sm:$0xff]   ;;  %v4670_v24 = vld [vmem:[#allocation5 + $0x460] ss:$16 sps:$4 sm:$0xff]  }
  0x66   :  { %3260 = vmatpush2.bf16.msra.mxu0 %v4610_v42  ;;  %v4675_v23 = vld [vmem:[#allocation5 + $0x664] ss:$16 sps:$4 sm:$0xff]   ;;  %v4673_v25 = vld [vmem:[#allocation5 + $0x660] ss:$16 sps:$4 sm:$0xff]  }
  0x67   :  { %3301 = vmatpush2.bf16.msra.mxu1 %v4611_v43  ;;  %3261 = vmatprep.subr.bf16.mxu0 %v4612_v44  ;;  %v4678_v26 = vld [vmem:[#allocation5 + $0x444] ss:$16 sps:$4 sm:$0xff]   ;;  %v4676_v28 = vld [vmem:[#allocation5 + $0x440] ss:$16 sps:$4 sm:$0xff]  }
  0x68   :  { %3302 = vmatprep.subr.bf16.mxu1 %v4614_v45  ;;  %v4681_v27 = vld [vmem:[#allocation5 + $0x644] ss:$16 sps:$4 sm:$0xff]   ;;  %v4679_v29 = vld [vmem:[#allocation5 + $0x640] ss:$16 sps:$4 sm:$0xff]  }
  0x69   :  { %v4684_v30 = vld [vmem:[#allocation5 + $0x424] ss:$16 sps:$4 sm:$0xff]   ;;  %v4682_v34 = vld [vmem:[#allocation5 + $0x420] ss:$16 sps:$4 sm:$0xff]  }
  0x6a   :  { %3262 = vmatpush2.bf16.msra.mxu0 %v4616_v49  ;;  %v4687_v31 = vld [vmem:[#allocation5 + $0x624] ss:$16 sps:$4 sm:$0xff]   ;;  %v4685_v35 = vld [vmem:[#allocation5 + $0x620] ss:$16 sps:$4 sm:$0xff]  }
  0x6b   :  { %3303 = vmatpush2.bf16.msra.mxu1 %v4617_v50  ;;  %3263 = vmatprep.subr.bf16.mxu0 %v4618_v52  ;;  %v5528_v32 = vld [vmem:[#allocation2 + $0x10] sm:$0xff] }
  0x6c   :  { %3304 = vmatprep.subr.bf16.mxu1 %v4620_v53  ;;  %v5534_v36 = vcombine.high %v5528_v32, %v5528_v32  ;;  %v4690_v38 = vld [vmem:[#allocation5 + $0x404] ss:$16 sps:$4 sm:$0xff]   ;;  %v4688_v40 = vld [vmem:[#allocation5 + $0x400] ss:$16 sps:$4 sm:$0xff]  }
  0x6d   :  { %v4693_v39 = vld [vmem:[#allocation5 + $0x604] ss:$16 sps:$4 sm:$0xff]   ;;  %v4691_v41 = vld [vmem:[#allocation5 + $0x600] ss:$16 sps:$4 sm:$0xff]  }
  0x6e   :  { %3264 = vmatpush2.bf16.msra.mxu0 %v4622_v54  ;;  %v4696_v42 = vld [vmem:[#allocation5 + $0x5e4] ss:$16 sps:$4 sm:$0xff]   ;;  %v4694_v44 = vld [vmem:[#allocation5 + $0x5e0] ss:$16 sps:$4 sm:$0xff]  }
  0x6f   :  { %3305 = vmatpush2.bf16.msra.mxu1 %v4623_v55  ;;  %3265 = vmatprep.subr.bf16.mxu0 %v4624_v56  ;;  %v4699_v43 = vld [vmem:[#allocation5 + $0x7e4] ss:$16 sps:$4 sm:$0xff]   ;;  %v4697_v45 = vld [vmem:[#allocation5 + $0x7e0] ss:$16 sps:$4 sm:$0xff]  }
  0x70   :  { %3306 = vmatprep.subr.bf16.mxu1 %v4626_v57  ;;  %v4702_v46 = vld [vmem:[#allocation5 + $0x5c4] ss:$16 sps:$4 sm:$0xff]   ;;  %v4700_v49 = vld [vmem:[#allocation5 + $0x5c0] ss:$16 sps:$4 sm:$0xff]  }
  0x71   :  { %v4705_v48 = vld [vmem:[#allocation5 + $0x7c4] ss:$16 sps:$4 sm:$0xff]   ;;  %v4703_v50 = vld [vmem:[#allocation5 + $0x7c0] ss:$16 sps:$4 sm:$0xff]  }
  0x72   :  { %3266 = vmatpush2.bf16.msra.mxu0 %v4628_v58  ;;  %v4708_v52 = vld [vmem:[#allocation5 + $0x5a4] ss:$16 sps:$4 sm:$0xff]   ;;  %v4706_v54 = vld [vmem:[#allocation5 + $0x5a0] ss:$16 sps:$4 sm:$0xff]  }
  0x73   :  { %3307 = vmatpush2.bf16.msra.mxu1 %v4629_v59  ;;  %3267 = vmatprep.subr.bf16.mxu0 %v4630_v60  ;;  %v4711_v53 = vld [vmem:[#allocation5 + $0x7a4] ss:$16 sps:$4 sm:$0xff]   ;;  %v4709_v55 = vld [vmem:[#allocation5 + $0x7a0] ss:$16 sps:$4 sm:$0xff]  }
  0x74   :  { %3308 = vmatprep.subr.bf16.mxu1 %v4632_v61  ;;  %v4714_v56 = vld [vmem:[#allocation5 + $0x584] ss:$16 sps:$4 sm:$0xff]   ;;  %v4712_v58 = vld [vmem:[#allocation5 + $0x580] ss:$16 sps:$4 sm:$0xff]  }
  0x75   :  { %v4717_v57 = vld [vmem:[#allocation5 + $0x784] ss:$16 sps:$4 sm:$0xff]   ;;  %v4715_v59 = vld [vmem:[#allocation5 + $0x780] ss:$16 sps:$4 sm:$0xff]  }
  0x76   :  { %3268 = vmatpush2.bf16.msra.mxu0 %v4634_v62  ;;  %v4720_v60 = vld [vmem:[#allocation5 + $0x564] ss:$16 sps:$4 sm:$0xff]   ;;  %v4718_v62 = vld [vmem:[#allocation5 + $0x560] ss:$16 sps:$4 sm:$0xff]  }
  0x77   :  { %3309 = vmatpush2.bf16.msra.mxu1 %v4635_v63  ;;  %3269 = vmatprep.subr.bf16.mxu0 %v4636_v0  ;;  %v4723_v61 = vld [vmem:[#allocation5 + $0x764] ss:$16 sps:$4 sm:$0xff]   ;;  %v4721_v63 = vld [vmem:[#allocation5 + $0x760] ss:$16 sps:$4 sm:$0xff]  }
  0x78   :  { %3310 = vmatprep.subr.bf16.mxu1 %v4638_v1  ;;  %v4726_v0 = vld [vmem:[#allocation5 + $0x544] ss:$16 sps:$4 sm:$0xff]  }
  0x79   :  { %v4729_v1 = vld [vmem:[#allocation5 + $0x744] ss:$16 sps:$4 sm:$0xff]  }
  0x7a   :  { %3270 = vmatpush2.bf16.msra.mxu0 %v4640_v2  ;;  %v4724_v2 = vld [vmem:[#allocation5 + $0x540] ss:$16 sps:$4 sm:$0xff]  }
  0x7b   :  { %3311 = vmatpush2.bf16.msra.mxu1 %v4641_v3  ;;  %3321 = vmatprep.subr.bf16.mxu0 %v4648_v4  ;;  %v4727_v3 = vld [vmem:[#allocation5 + $0x740] ss:$16 sps:$4 sm:$0xff]   ;;  %v4732_v4 = vld [vmem:[#allocation5 + $0x524] ss:$16 sps:$4 sm:$0xff]  }
  0x7c   :  { %3362 = vmatprep.subr.bf16.mxu1 %v4651_v5  ;;  %v4735_v5 = vld [vmem:[#allocation5 + $0x724] ss:$16 sps:$4 sm:$0xff]  }
  0x7d   :  { %3272 = vmatmul.mubr.bf16.vlgmr.msra.gmra.mxu0 %v5522_v6 }
  0x7e   :  { %3313 = vmatmul.mubr.bf16.vlgmr.msra.gmra.mxu1 %v5524_v7  ;;  %3322 = vmatpush1.bf16.msra.mxu0 %v4646_v8  ;;  %v4730_v8 = vld [vmem:[#allocation5 + $0x520] ss:$16 sps:$4 sm:$0xff]  }
  0x7f   :  { %3363 = vmatpush1.bf16.msra.mxu1 %v4649_v9  ;;  %3323 = vmatprep.subr.bf16.mxu0 %v4654_v10  ;;  %v4733_v9 = vld [vmem:[#allocation5 + $0x720] ss:$16 sps:$4 sm:$0xff]   ;;  %v4738_v10 = vld [vmem:[#allocation5 + $0x504] ss:$16 sps:$4 sm:$0xff]  }
  0x80   :  { %3364 = vmatprep.subr.bf16.mxu1 %v4657_v11  ;;  %3353 = vmatprep.mubr.bf16.mxu0 %v5534_v36  ;;  %v4741_v11 = vld [vmem:[#allocation5 + $0x704] ss:$16 sps:$4 sm:$0xff]  }
  0x81   :  { %3394 = vmatprep.mubr.bf16.mxu1 %v5538_v37 }
  0x82   :  { %3324 = vmatpush1.bf16.msra.mxu0 %v4652_v12  ;;  %v4736_v12 = vld [vmem:[#allocation5 + $0x500] ss:$16 sps:$4 sm:$0xff]  }
  0x83   :  { %3365 = vmatpush1.bf16.msra.mxu1 %v4655_v13  ;;  %3325 = vmatprep.subr.bf16.mxu0 %v4660_v14  ;;  %v4739_v13 = vld [vmem:[#allocation5 + $0x700] ss:$16 sps:$4 sm:$0xff]   ;;  %v4748_v14 = vld [vmem:[#allocation5 + $0x8e4] ss:$16 sps:$4 sm:$0xff]  }
  0x84   :  { %3366 = vmatprep.subr.bf16.mxu1 %v4663_v15  ;;  %v4751_v15 = vld [vmem:[#allocation5 + $0xae4] ss:$16 sps:$4 sm:$0xff]  }
  0x86   :  { %3326 = vmatpush1.bf16.msra.mxu0 %v4658_v16  ;;  %v5544_v16 = vcombine.low %v5528_v32, %v5528_v32  ;;  %v4766_v32 = vld [vmem:[#allocation5 + $0x884] ss:$16 sps:$4 sm:$0xff]  }
  0x87   :  { %3367 = vmatpush1.bf16.msra.mxu1 %v4661_v17  ;;  %3327 = vmatprep.subr.bf16.mxu0 %v4666_v18  ;;  %v5548_v17 = vcombine.low %v5530_v33, %v5530_v33  ;;  %v4746_v18 = vld [vmem:[#allocation5 + $0x8e0] ss:$16 sps:$4 sm:$0xff]   ;;  %v4769_v33 = vld [vmem:[#allocation5 + $0xa84] ss:$16 sps:$4 sm:$0xff]  }
  0x88   :  { %3368 = vmatprep.subr.bf16.mxu1 %v4669_v19  ;;  %v4749_v19 = vld [vmem:[#allocation5 + $0xae0] ss:$16 sps:$4 sm:$0xff]  }
  0x8a   :  { %3328 = vmatpush1.bf16.msra.mxu0 %v4664_v20  ;;  %v4754_v20 = vld [vmem:[#allocation5 + $0x8c4] ss:$16 sps:$4 sm:$0xff]  }
  0x8b   :  { %3369 = vmatpush1.bf16.msra.mxu1 %v4667_v21  ;;  %3329 = vmatprep.subr.bf16.mxu0 %v4672_v22  ;;  %v4757_v21 = vld [vmem:[#allocation5 + $0xac4] ss:$16 sps:$4 sm:$0xff]  }
  0x8c   :  { %3370 = vmatprep.subr.bf16.mxu1 %v4675_v23  ;;  %v5550_v22 = vld [vmem:[#allocation2 + $0x20] sm:$0xff]  ;;  %v5552_v23 = vld [vmem:[#allocation2 + $0x28] sm:$0xff] }
  0x8e   :  { %3330 = vmatpush1.bf16.msra.mxu0 %v4670_v24  ;;  %v5556_v24 = vcombine.high %v5550_v22, %v5550_v22 }
  0x8f   :  { %3371 = vmatpush1.bf16.msra.mxu1 %v4673_v25  ;;  %3331 = vmatprep.subr.bf16.mxu0 %v4678_v26  ;;  %v5560_v25 = vcombine.high %v5552_v23, %v5552_v23  ;;  %v4752_v26 = vld [vmem:[#allocation5 + $0x8c0] ss:$16 sps:$4 sm:$0xff]  }
  0x90   :  { %3372 = vmatprep.subr.bf16.mxu1 %v4681_v27  ;;  %v4755_v27 = vld [vmem:[#allocation5 + $0xac0] ss:$16 sps:$4 sm:$0xff]  }
  0x92   :  { %3332 = vmatpush1.bf16.msra.mxu0 %v4676_v28  ;;  %v4760_v28 = vld [vmem:[#allocation5 + $0x8a4] ss:$16 sps:$4 sm:$0xff]  }
  0x93   :  { %3373 = vmatpush1.bf16.msra.mxu1 %v4679_v29  ;;  %3333 = vmatprep.subr.bf16.mxu0 %v4684_v30  ;;  %v4763_v29 = vld [vmem:[#allocation5 + $0xaa4] ss:$16 sps:$4 sm:$0xff]   ;;  %v4758_v30 = vld [vmem:[#allocation5 + $0x8a0] ss:$16 sps:$4 sm:$0xff]  }
  0x94   :  { %3374 = vmatprep.subr.bf16.mxu1 %v4687_v31  ;;  %v4761_v31 = vld [vmem:[#allocation5 + $0xaa0] ss:$16 sps:$4 sm:$0xff]  }
  0x96   :  { %3334 = vmatpush1.bf16.msra.mxu0 %v4682_v34  ;;  %v4764_v34 = vld [vmem:[#allocation5 + $0x880] ss:$16 sps:$4 sm:$0xff]  }
  0x97   :  { %3375 = vmatpush1.bf16.msra.mxu1 %v4685_v35  ;;  %3335 = vmatprep.subr.bf16.mxu0 %v4690_v38  ;;  %v4767_v35 = vld [vmem:[#allocation5 + $0xa80] ss:$16 sps:$4 sm:$0xff]   ;;  %v4772_v38 = vld [vmem:[#allocation5 + $0x864] ss:$16 sps:$4 sm:$0xff]  }
  0x98   :  { %3376 = vmatprep.subr.bf16.mxu1 %v4693_v39  ;;  %v4775_v39 = vld [vmem:[#allocation5 + $0xa64] ss:$16 sps:$4 sm:$0xff]  }
  0x9a   :  { %3336 = vmatpush1.bf16.msra.mxu0 %v4688_v40  ;;  %v4770_v40 = vld [vmem:[#allocation5 + $0x860] ss:$16 sps:$4 sm:$0xff]  }
  0x9b   :  { %3377 = vmatpush1.bf16.msra.mxu1 %v4691_v41  ;;  %3337 = vmatprep.subr.bf16.mxu0 %v4696_v42  ;;  %v4773_v41 = vld [vmem:[#allocation5 + $0xa60] ss:$16 sps:$4 sm:$0xff]   ;;  %v4778_v42 = vld [vmem:[#allocation5 + $0x844] ss:$16 sps:$4 sm:$0xff]  }
  0x9c   :  { %3378 = vmatprep.subr.bf16.mxu1 %v4699_v43  ;;  %v4781_v43 = vld [vmem:[#allocation5 + $0xa44] ss:$16 sps:$4 sm:$0xff]  }
  0x9e   :  { %3338 = vmatpush2.bf16.msra.mxu0 %v4694_v44  ;;  %v4776_v44 = vld [vmem:[#allocation5 + $0x840] ss:$16 sps:$4 sm:$0xff]  }
  0x9f   :  { %3379 = vmatpush2.bf16.msra.mxu1 %v4697_v45  ;;  %3339 = vmatprep.subr.bf16.mxu0 %v4702_v46  ;;  %v4779_v45 = vld [vmem:[#allocation5 + $0xa40] ss:$16 sps:$4 sm:$0xff]   ;;  %v4784_v46 = vld [vmem:[#allocation5 + $0x824] ss:$16 sps:$4 sm:$0xff]  }
  0xa0   :  { %3380 = vmatprep.subr.bf16.mxu1 %v4705_v48  ;;  %v4787_v48 = vld [vmem:[#allocation5 + $0xa24] ss:$16 sps:$4 sm:$0xff]  }
  0xa2   :  { %3340 = vmatpush2.bf16.msra.mxu0 %v4700_v49  ;;  %v4782_v49 = vld [vmem:[#allocation5 + $0x820] ss:$16 sps:$4 sm:$0xff]  }
  0xa3   :  { %3381 = vmatpush2.bf16.msra.mxu1 %v4703_v50  ;;  %3341 = vmatprep.subr.bf16.mxu0 %v4708_v52  ;;  %v4785_v50 = vld [vmem:[#allocation5 + $0xa20] ss:$16 sps:$4 sm:$0xff]   ;;  %v4790_v52 = vld [vmem:[#allocation5 + $0x804] ss:$16 sps:$4 sm:$0xff]  }
  0xa4   :  { %3382 = vmatprep.subr.bf16.mxu1 %v4711_v53  ;;  %v4793_v53 = vld [vmem:[#allocation5 + $0xa04] ss:$16 sps:$4 sm:$0xff]  }
  0xa6   :  { %3342 = vmatpush2.bf16.msra.mxu0 %v4706_v54  ;;  %v4788_v54 = vld [vmem:[#allocation5 + $0x800] ss:$16 sps:$4 sm:$0xff]  }
  0xa7   :  { %3383 = vmatpush2.bf16.msra.mxu1 %v4709_v55  ;;  %3343 = vmatprep.subr.bf16.mxu0 %v4714_v56  ;;  %v4791_v55 = vld [vmem:[#allocation5 + $0xa00] ss:$16 sps:$4 sm:$0xff]   ;;  %v4796_v56 = vld [vmem:[#allocation5 + $0x9e4] ss:$16 sps:$4 sm:$0xff]  }
  0xa8   :  { %3384 = vmatprep.subr.bf16.mxu1 %v4717_v57  ;;  %v4799_v57 = vld [vmem:[#allocation5 + $0xbe4] ss:$16 sps:$4 sm:$0xff]  }
  0xaa   :  { %3344 = vmatpush2.bf16.msra.mxu0 %v4712_v58  ;;  %v4794_v58 = vld [vmem:[#allocation5 + $0x9e0] ss:$16 sps:$4 sm:$0xff]  }
  0xab   :  { %3385 = vmatpush2.bf16.msra.mxu1 %v4715_v59  ;;  %3345 = vmatprep.subr.bf16.mxu0 %v4720_v60  ;;  %v4797_v59 = vld [vmem:[#allocation5 + $0xbe0] ss:$16 sps:$4 sm:$0xff]   ;;  %v4802_v60 = vld [vmem:[#allocation5 + $0x9c4] ss:$16 sps:$4 sm:$0xff]  }
  0xac   :  { %3386 = vmatprep.subr.bf16.mxu1 %v4723_v61  ;;  %v4805_v61 = vld [vmem:[#allocation5 + $0xbc4] ss:$16 sps:$4 sm:$0xff]  }
  0xae   :  { %3346 = vmatpush2.bf16.msra.mxu0 %v4718_v62  ;;  %v4800_v62 = vld [vmem:[#allocation5 + $0x9c0] ss:$16 sps:$4 sm:$0xff]  }
  0xaf   :  { %3387 = vmatpush2.bf16.msra.mxu1 %v4721_v63  ;;  %3347 = vmatprep.subr.bf16.mxu0 %v4726_v0  ;;  %v4803_v63 = vld [vmem:[#allocation5 + $0xbc0] ss:$16 sps:$4 sm:$0xff]   ;;  %v4808_v0 = vld [vmem:[#allocation5 + $0x9a4] ss:$16 sps:$4 sm:$0xff]  }
  0xb0   :  { %3388 = vmatprep.subr.bf16.mxu1 %v4729_v1  ;;  %v4811_v1 = vld [vmem:[#allocation5 + $0xba4] ss:$16 sps:$4 sm:$0xff]  }
  0xb2   :  { %3348 = vmatpush2.bf16.msra.mxu0 %v4724_v2  ;;  %v4806_v2 = vld [vmem:[#allocation5 + $0x9a0] ss:$16 sps:$4 sm:$0xff]  }
  0xb3   :  { %3389 = vmatpush2.bf16.msra.mxu1 %v4727_v3  ;;  %3349 = vmatprep.subr.bf16.mxu0 %v4732_v4  ;;  %v4809_v3 = vld [vmem:[#allocation5 + $0xba0] ss:$16 sps:$4 sm:$0xff]   ;;  %v4814_v4 = vld [vmem:[#allocation5 + $0x984] ss:$16 sps:$4 sm:$0xff]  }
  0xb4   :  { %3390 = vmatprep.subr.bf16.mxu1 %v4735_v5  ;;  %v4817_v5 = vld [vmem:[#allocation5 + $0xb84] ss:$16 sps:$4 sm:$0xff]  }
  0xb6   :  { %3350 = vmatpush2.bf16.msra.mxu0 %v4730_v8  ;;  %v4812_v8 = vld [vmem:[#allocation5 + $0x980] ss:$16 sps:$4 sm:$0xff]  }
  0xb7   :  { %3391 = vmatpush2.bf16.msra.mxu1 %v4733_v9  ;;  %3351 = vmatprep.subr.bf16.mxu0 %v4738_v10  ;;  %v4815_v9 = vld [vmem:[#allocation5 + $0xb80] ss:$16 sps:$4 sm:$0xff]   ;;  %v4820_v10 = vld [vmem:[#allocation5 + $0x964] ss:$16 sps:$4 sm:$0xff]  }
  0xb8   :  { %3392 = vmatprep.subr.bf16.mxu1 %v4741_v11  ;;  %v4823_v11 = vld [vmem:[#allocation5 + $0xb64] ss:$16 sps:$4 sm:$0xff]  }
  0xba   :  { %3352 = vmatpush2.bf16.msra.mxu0 %v4736_v12  ;;  %v4818_v12 = vld [vmem:[#allocation5 + $0x960] ss:$16 sps:$4 sm:$0xff]  }
  0xbb   :  { %3393 = vmatpush2.bf16.msra.mxu1 %v4739_v13  ;;  %3403 = vmatprep.subr.bf16.mxu0 %v4748_v14  ;;  %v4821_v13 = vld [vmem:[#allocation5 + $0xb60] ss:$16 sps:$4 sm:$0xff]   ;;  %v4826_v14 = vld [vmem:[#allocation5 + $0x944] ss:$16 sps:$4 sm:$0xff]  }
  0xbc   :  { %3444 = vmatprep.subr.bf16.mxu1 %v4751_v15  ;;  %v4829_v15 = vld [vmem:[#allocation5 + $0xb44] ss:$16 sps:$4 sm:$0xff]  }
  0xbd   :  { %3354 = vmatmul.mubr.bf16.vlgmr.msra.gmra.mxu0 %v5544_v16 }
  0xbe   :  { %3395 = vmatmul.mubr.bf16.vlgmr.msra.gmra.mxu1 %v5548_v17  ;;  %3404 = vmatpush1.bf16.msra.mxu0 %v4746_v18  ;;  %v4824_v18 = vld [vmem:[#allocation5 + $0x940] ss:$16 sps:$4 sm:$0xff]  }
  0xbf   :  { %3445 = vmatpush1.bf16.msra.mxu1 %v4749_v19  ;;  %3405 = vmatprep.subr.bf16.mxu0 %v4754_v20  ;;  %v4827_v19 = vld [vmem:[#allocation5 + $0xb40] ss:$16 sps:$4 sm:$0xff]   ;;  %v4832_v20 = vld [vmem:[#allocation5 + $0x924] ss:$16 sps:$4 sm:$0xff]  }
  0xc0   :  { %3446 = vmatprep.subr.bf16.mxu1 %v4757_v21  ;;  %3435 = vmatprep.mubr.bf16.mxu0 %v5556_v24  ;;  %v4835_v21 = vld [vmem:[#allocation5 + $0xb24] ss:$16 sps:$4 sm:$0xff]  }
  0xc1   :  { %3476 = vmatprep.mubr.bf16.mxu1 %v5560_v25 }
  0xc2   :  { %3406 = vmatpush1.bf16.msra.mxu0 %v4752_v26  ;;  %v4830_v26 = vld [vmem:[#allocation5 + $0x920] ss:$16 sps:$4 sm:$0xff]  }
  0xc3   :  { %3447 = vmatpush1.bf16.msra.mxu1 %v4755_v27  ;;  %3407 = vmatprep.subr.bf16.mxu0 %v4760_v28  ;;  %v4833_v27 = vld [vmem:[#allocation5 + $0xb20] ss:$16 sps:$4 sm:$0xff]   ;;  %v4838_v28 = vld [vmem:[#allocation5 + $0x904] ss:$16 sps:$4 sm:$0xff]  }
  0xc4   :  { %3448 = vmatprep.subr.bf16.mxu1 %v4763_v29  ;;  %v4841_v29 = vld [vmem:[#allocation5 + $0xb04] ss:$16 sps:$4 sm:$0xff]  }
  0xc6   :  { %3408 = vmatpush1.bf16.msra.mxu0 %v4758_v30  ;;  %v4836_v30 = vld [vmem:[#allocation5 + $0x900] ss:$16 sps:$4 sm:$0xff]  }
  0xc7   :  { %3449 = vmatpush1.bf16.msra.mxu1 %v4761_v31  ;;  %3409 = vmatprep.subr.bf16.mxu0 %v4766_v32  ;;  %v4839_v31 = vld [vmem:[#allocation5 + $0xb00] ss:$16 sps:$4 sm:$0xff]   ;;  %v4848_v32 = vld [vmem:[#allocation5 + $0xce4] ss:$16 sps:$4 sm:$0xff]  }
  0xc8   :  { %3450 = vmatprep.subr.bf16.mxu1 %v4769_v33  ;;  %v4851_v33 = vld [vmem:[#allocation5 + $0xee4] ss:$16 sps:$4 sm:$0xff]  }
  0xca   :  { %3410 = vmatpush1.bf16.msra.mxu0 %v4764_v34  ;;  %v5566_v34 = vld [vmem:[#allocation2 + $0x30] sm:$0xff] }
  0xcb   :  { %3451 = vmatpush1.bf16.msra.mxu1 %v4767_v35  ;;  %3411 = vmatprep.subr.bf16.mxu0 %v4772_v38  ;;  %v5570_v35 = vcombine.low %v5550_v22, %v5550_v22  ;;  %v5574_v38 = vcombine.low %v5552_v23, %v5552_v23  ;;  %v4852_v23 = vld [vmem:[#allocation5 + $0xcc0] ss:$16 sps:$4 sm:$0xff]  }
  0xcc   :  { %3452 = vmatprep.subr.bf16.mxu1 %v4775_v39  ;;  %v5576_v39 = vld [vmem:[#allocation2 + $0x38] sm:$0xff] }
  0xcd   :  { %v5584_v22 = vcombine.high %v5576_v39, %v5576_v39 }
  0xce   :  { %3412 = vmatpush1.bf16.msra.mxu0 %v4770_v40  ;;  %v4846_v40 = vld [vmem:[#allocation5 + $0xce0] ss:$16 sps:$4 sm:$0xff]  }
  0xcf   :  { %3453 = vmatpush1.bf16.msra.mxu1 %v4773_v41  ;;  %3413 = vmatprep.subr.bf16.mxu0 %v4778_v42  ;;  %v4849_v41 = vld [vmem:[#allocation5 + $0xee0] ss:$16 sps:$4 sm:$0xff]   ;;  %v4854_v42 = vld [vmem:[#allocation5 + $0xcc4] ss:$16 sps:$4 sm:$0xff]  }
  0xd0   :  { %3454 = vmatprep.subr.bf16.mxu1 %v4781_v43  ;;  %v4857_v43 = vld [vmem:[#allocation5 + $0xec4] ss:$16 sps:$4 sm:$0xff]  }
  0xd2   :  { %3414 = vmatpush1.bf16.msra.mxu0 %v4776_v44  ;;  %v5580_v44 = vcombine.high %v5566_v34, %v5566_v34 }
  0xd3   :  { %3455 = vmatpush1.bf16.msra.mxu1 %v4779_v45  ;;  %3415 = vmatprep.subr.bf16.mxu0 %v4784_v46  ;;  %v4855_v45 = vld [vmem:[#allocation5 + $0xec0] ss:$16 sps:$4 sm:$0xff]   ;;  %v4860_v46 = vld [vmem:[#allocation5 + $0xca4] ss:$16 sps:$4 sm:$0xff]  }
  0xd4   :  { %3456 = vmatprep.subr.bf16.mxu1 %v4787_v48  ;;  %v4863_v48 = vld [vmem:[#allocation5 + $0xea4] ss:$16 sps:$4 sm:$0xff]  }
  0xd6   :  { %3416 = vmatpush1.bf16.msra.mxu0 %v4782_v49  ;;  %v4858_v49 = vld [vmem:[#allocation5 + $0xca0] ss:$16 sps:$4 sm:$0xff]  }
  0xd7   :  { %3457 = vmatpush1.bf16.msra.mxu1 %v4785_v50  ;;  %3417 = vmatprep.subr.bf16.mxu0 %v4790_v52  ;;  %v4861_v50 = vld [vmem:[#allocation5 + $0xea0] ss:$16 sps:$4 sm:$0xff]   ;;  %v4866_v52 = vld [vmem:[#allocation5 + $0xc84] ss:$16 sps:$4 sm:$0xff]  }
  0xd8   :  { %3458 = vmatprep.subr.bf16.mxu1 %v4793_v53  ;;  %v4869_v53 = vld [vmem:[#allocation5 + $0xe84] ss:$16 sps:$4 sm:$0xff]  }
  0xda   :  { %3418 = vmatpush1.bf16.msra.mxu0 %v4788_v54  ;;  %v4864_v54 = vld [vmem:[#allocation5 + $0xc80] ss:$16 sps:$4 sm:$0xff]  }
  0xdb   :  { %3459 = vmatpush1.bf16.msra.mxu1 %v4791_v55  ;;  %3419 = vmatprep.subr.bf16.mxu0 %v4796_v56  ;;  %v4867_v55 = vld [vmem:[#allocation5 + $0xe80] ss:$16 sps:$4 sm:$0xff]   ;;  %v4872_v56 = vld [vmem:[#allocation5 + $0xc64] ss:$16 sps:$4 sm:$0xff]  }
  0xdc   :  { %3460 = vmatprep.subr.bf16.mxu1 %v4799_v57  ;;  %v4875_v57 = vld [vmem:[#allocation5 + $0xe64] ss:$16 sps:$4 sm:$0xff]  }
  0xde   :  { %3420 = vmatpush2.bf16.msra.mxu0 %v4794_v58  ;;  %v4870_v58 = vld [vmem:[#allocation5 + $0xc60] ss:$16 sps:$4 sm:$0xff]  }
  0xdf   :  { %3461 = vmatpush2.bf16.msra.mxu1 %v4797_v59  ;;  %3421 = vmatprep.subr.bf16.mxu0 %v4802_v60  ;;  %v4873_v59 = vld [vmem:[#allocation5 + $0xe60] ss:$16 sps:$4 sm:$0xff]   ;;  %v4878_v60 = vld [vmem:[#allocation5 + $0xc44] ss:$16 sps:$4 sm:$0xff]  }
  0xe0   :  { %3462 = vmatprep.subr.bf16.mxu1 %v4805_v61  ;;  %v4881_v61 = vld [vmem:[#allocation5 + $0xe44] ss:$16 sps:$4 sm:$0xff]  }
  0xe2   :  { %3422 = vmatpush2.bf16.msra.mxu0 %v4800_v62  ;;  %v4876_v62 = vld [vmem:[#allocation5 + $0xc40] ss:$16 sps:$4 sm:$0xff]  }
  0xe3   :  { %3463 = vmatpush2.bf16.msra.mxu1 %v4803_v63  ;;  %3423 = vmatprep.subr.bf16.mxu0 %v4808_v0  ;;  %v4879_v63 = vld [vmem:[#allocation5 + $0xe40] ss:$16 sps:$4 sm:$0xff]   ;;  %v4884_v0 = vld [vmem:[#allocation5 + $0xc24] ss:$16 sps:$4 sm:$0xff]  }
  0xe4   :  { %3464 = vmatprep.subr.bf16.mxu1 %v4811_v1  ;;  %v4887_v1 = vld [vmem:[#allocation5 + $0xe24] ss:$16 sps:$4 sm:$0xff]  }
  0xe6   :  { %3424 = vmatpush2.bf16.msra.mxu0 %v4806_v2  ;;  %v4882_v2 = vld [vmem:[#allocation5 + $0xc20] ss:$16 sps:$4 sm:$0xff]  }
  0xe7   :  { %3465 = vmatpush2.bf16.msra.mxu1 %v4809_v3  ;;  %3425 = vmatprep.subr.bf16.mxu0 %v4814_v4  ;;  %v4885_v3 = vld [vmem:[#allocation5 + $0xe20] ss:$16 sps:$4 sm:$0xff]   ;;  %v4890_v4 = vld [vmem:[#allocation5 + $0xc04] ss:$16 sps:$4 sm:$0xff]  }
  0xe8   :  { %3466 = vmatprep.subr.bf16.mxu1 %v4817_v5  ;;  %v4893_v5 = vld [vmem:[#allocation5 + $0xe04] ss:$16 sps:$4 sm:$0xff]  }
  0xea   :  { %3426 = vmatpush2.bf16.msra.mxu0 %v4812_v8  ;;  %v4888_v8 = vld [vmem:[#allocation5 + $0xc00] ss:$16 sps:$4 sm:$0xff]  }
  0xeb   :  { %3467 = vmatpush2.bf16.msra.mxu1 %v4815_v9  ;;  %3427 = vmatprep.subr.bf16.mxu0 %v4820_v10  ;;  %v4891_v9 = vld [vmem:[#allocation5 + $0xe00] ss:$16 sps:$4 sm:$0xff]   ;;  %v4896_v10 = vld [vmem:[#allocation5 + $0xde4] ss:$16 sps:$4 sm:$0xff]  }
  0xec   :  { %3468 = vmatprep.subr.bf16.mxu1 %v4823_v11  ;;  %v4899_v11 = vld [vmem:[#allocation5 + $0xfe4] ss:$16 sps:$4 sm:$0xff]  }
  0xee   :  { %3428 = vmatpush2.bf16.msra.mxu0 %v4818_v12  ;;  %v4894_v12 = vld [vmem:[#allocation5 + $0xde0] ss:$16 sps:$4 sm:$0xff]  }
  0xef   :  { %3469 = vmatpush2.bf16.msra.mxu1 %v4821_v13  ;;  %3429 = vmatprep.subr.bf16.mxu0 %v4826_v14  ;;  %v4897_v13 = vld [vmem:[#allocation5 + $0xfe0] ss:$16 sps:$4 sm:$0xff]   ;;  %v4902_v14 = vld [vmem:[#allocation5 + $0xdc4] ss:$16 sps:$4 sm:$0xff]  }
  0xf0   :  { %3470 = vmatprep.subr.bf16.mxu1 %v4829_v15  ;;  %v4905_v15 = vld [vmem:[#allocation5 + $0xfc4] ss:$16 sps:$4 sm:$0xff]  }
  0xf2   :  { %3430 = vmatpush2.bf16.msra.mxu0 %v4824_v18  ;;  %v4900_v18 = vld [vmem:[#allocation5 + $0xdc0] ss:$16 sps:$4 sm:$0xff]  }
  0xf3   :  { %3471 = vmatpush2.bf16.msra.mxu1 %v4827_v19  ;;  %3431 = vmatprep.subr.bf16.mxu0 %v4832_v20  ;;  %v4903_v19 = vld [vmem:[#allocation5 + $0xfc0] ss:$16 sps:$4 sm:$0xff]   ;;  %v4908_v20 = vld [vmem:[#allocation5 + $0xda4] ss:$16 sps:$4 sm:$0xff]  }
  0xf4   :  { %3472 = vmatprep.subr.bf16.mxu1 %v4835_v21  ;;  %v4911_v21 = vld [vmem:[#allocation5 + $0xfa4] ss:$16 sps:$4 sm:$0xff]  }
  0xf6   :  { %3432 = vmatpush2.bf16.msra.mxu0 %v4830_v26  ;;  %v4906_v26 = vld [vmem:[#allocation5 + $0xda0] ss:$16 sps:$4 sm:$0xff]  }
  0xf7   :  { %3473 = vmatpush2.bf16.msra.mxu1 %v4833_v27  ;;  %3433 = vmatprep.subr.bf16.mxu0 %v4838_v28  ;;  %v4909_v27 = vld [vmem:[#allocation5 + $0xfa0] ss:$16 sps:$4 sm:$0xff]   ;;  %v4914_v28 = vld [vmem:[#allocation5 + $0xd84] ss:$16 sps:$4 sm:$0xff]  }
  0xf8   :  { %3474 = vmatprep.subr.bf16.mxu1 %v4841_v29  ;;  %v4917_v29 = vld [vmem:[#allocation5 + $0xf84] ss:$16 sps:$4 sm:$0xff]  }
  0xfa   :  { %3434 = vmatpush2.bf16.msra.mxu0 %v4836_v30  ;;  %v4912_v30 = vld [vmem:[#allocation5 + $0xd80] ss:$16 sps:$4 sm:$0xff]  }
  0xfb   :  { %3475 = vmatpush2.bf16.msra.mxu1 %v4839_v31  ;;  %3485 = vmatprep.subr.bf16.mxu0 %v4848_v32  ;;  %v4915_v31 = vld [vmem:[#allocation5 + $0xf80] ss:$16 sps:$4 sm:$0xff]   ;;  %v4920_v32 = vld [vmem:[#allocation5 + $0xd64] ss:$16 sps:$4 sm:$0xff]  }
  0xfc   :  { %3526 = vmatprep.subr.bf16.mxu1 %v4851_v33  ;;  %v4923_v33 = vld [vmem:[#allocation5 + $0xf64] ss:$16 sps:$4 sm:$0xff]  }
  0xfd   :  { %3436 = vmatmul.mubr.bf16.vlgmr.msra.gmra.mxu0 %v5570_v35 }
  0xfe   :  { %3477 = vmatmul.mubr.bf16.vlgmr.msra.gmra.mxu1 %v5574_v38  ;;  %3486 = vmatpush1.bf16.msra.mxu0 %v4846_v40  ;;  %v4918_v40 = vld [vmem:[#allocation5 + $0xd60] ss:$16 sps:$4 sm:$0xff]  }
  0xff   :  { %3527 = vmatpush1.bf16.msra.mxu1 %v4849_v41  ;;  %3487 = vmatprep.subr.bf16.mxu0 %v4854_v42  ;;  %v4921_v41 = vld [vmem:[#allocation5 + $0xf60] ss:$16 sps:$4 sm:$0xff]   ;;  %v4926_v42 = vld [vmem:[#allocation5 + $0xd44] ss:$16 sps:$4 sm:$0xff]  }
 0x100   :  { %3528 = vmatprep.subr.bf16.mxu1 %v4857_v43  ;;  %3517 = vmatprep.mubr.bf16.mxu0 %v5580_v44  ;;  %v4929_v43 = vld [vmem:[#allocation5 + $0xf44] ss:$16 sps:$4 sm:$0xff]  }
 0x101   :  { %3558 = vmatprep.mubr.bf16.mxu1 %v5584_v22 }
 0x102   :  { %3488 = vmatpush1.bf16.msra.mxu0 %v4852_v23  ;;  %v4924_v23 = vld [vmem:[#allocation5 + $0xd40] ss:$16 sps:$4 sm:$0xff]  }
 0x103   :  { %3529 = vmatpush1.bf16.msra.mxu1 %v4855_v45  ;;  %3489 = vmatprep.subr.bf16.mxu0 %v4860_v46  ;;  %v4927_v45 = vld [vmem:[#allocation5 + $0xf40] ss:$16 sps:$4 sm:$0xff]   ;;  %v603_v46 = vlaneseq }
 0x104   :  { %3530 = vmatprep.subr.bf16.mxu1 %v4863_v48  ;;  %v4932_v48 = vld [vmem:[#allocation5 + $0xd24] ss:$16 sps:$4 sm:$0xff]  }
 0x106   :  { %3490 = vmatpush1.bf16.msra.mxu0 %v4858_v49  ;;  %v4935_v49 = vld [vmem:[#allocation5 + $0xf24] ss:$16 sps:$4 sm:$0xff]  }
 0x107   :  { %3531 = vmatpush1.bf16.msra.mxu1 %v4861_v50  ;;  %3491 = vmatprep.subr.bf16.mxu0 %v4866_v52  ;;  %v4930_v50 = vld [vmem:[#allocation5 + $0xd20] ss:$16 sps:$4 sm:$0xff]  }
 0x108   :  { %3532 = vmatprep.subr.bf16.mxu1 %v4869_v53  ;;  %v4933_v52 = vld [vmem:[#allocation5 + $0xf20] ss:$16 sps:$4 sm:$0xff]   ;;  %v5590_v53 = vshrl.u32 %v603_v46, 7  ;;  %v4979_v46 = vld [vmem:[#allocation5 + $0x248] ss:$16 sps:$4 sm:$0xff]  }
 0x10a   :  { %3492 = vmatpush1.bf16.msra.mxu0 %v4864_v54  ;;  %v4938_v54 = vld [vmem:[#allocation5 + $0xd04] ss:$16 sps:$4 sm:$0xff]  }
 0x10b   :  { %3533 = vmatpush1.bf16.msra.mxu1 %v4867_v55  ;;  %3493 = vmatprep.subr.bf16.mxu0 %v4872_v56  ;;  %v4941_v55 = vld [vmem:[#allocation5 + $0xf04] ss:$16 sps:$4 sm:$0xff]   ;;  %v4936_v56 = vld [vmem:[#allocation5 + $0xd00] ss:$16 sps:$4 sm:$0xff]  }
 0x10c   :  { %3534 = vmatprep.subr.bf16.mxu1 %v4875_v57  ;;  %v4939_v57 = vld [vmem:[#allocation5 + $0xf00] ss:$16 sps:$4 sm:$0xff]  }
 0x10e   :  { %3494 = vmatpush1.bf16.msra.mxu0 %v4870_v58  ;;  %v601_v58 = vld [vmem:[#allocation7] sm:$0xf] }
 0x10f   :  { %3535 = vmatpush1.bf16.msra.mxu1 %v4873_v59  ;;  %3495 = vmatprep.subr.bf16.mxu0 %v4878_v60  ;;  %v5593_v59 = vsub.s32 0, %v5590_v53  ;;  %v4948_v60 = vld [vmem:[#allocation5 + $0xec] ss:$16 sps:$4 sm:$0xff]  }
 0x110   :  { %3536 = vmatprep.subr.bf16.mxu1 %v4881_v61  ;;  %v4951_v61 = vld [vmem:[#allocation5 + $0x2ec] ss:$16 sps:$4 sm:$0xff]  }
 0x112   :  { %3496 = vmatpush1.bf16.msra.mxu0 %v4876_v62  ;;  %v5596_v62 = vsub.s32 1, %v5590_v53 }
 0x113   :  { %3537 = vmatpush1.bf16.msra.mxu1 %v4879_v63  ;;  %3497 = vmatprep.subr.bf16.mxu0 %v4884_v0  ;;  %v5600_v63 = vcombine.low %v5566_v34, %v5566_v34  ;;  %v5604_v0 = vcombine.low %v5576_v39, %v5576_v39  ;;  %v4952_v39 = vld [vmem:[#allocation5 + $0xc8] ss:$16 sps:$4 sm:$0xff]  }
 0x114   :  { %3538 = vmatprep.subr.bf16.mxu1 %v4887_v1  ;;  %v606_v1 = vrot.slane %v601_v58, %v5593_v59 }
 0x116   :  { %3498 = vmatpush1.bf16.msra.mxu0 %v4882_v2  ;;  %v4946_v2 = vld [vmem:[#allocation5 + $0xe8] ss:$16 sps:$4 sm:$0xff]  }
 0x117   :  { %3539 = vmatpush1.bf16.msra.mxu1 %v4885_v3  ;;  %3499 = vmatprep.subr.bf16.mxu0 %v4890_v4  ;;  %v4949_v3 = vld [vmem:[#allocation5 + $0x2e8] ss:$16 sps:$4 sm:$0xff]   ;;  %v4954_v4 = vld [vmem:[#allocation5 + $0xcc] ss:$16 sps:$4 sm:$0xff]  }
 0x118   :  { %3540 = vmatprep.subr.bf16.mxu1 %v4893_v5  ;;  %v4957_v5 = vld [vmem:[#allocation5 + $0x2cc] ss:$16 sps:$4 sm:$0xff]  }
 0x11a   :  { %3500 = vmatpush1.bf16.msra.mxu0 %v4888_v8  ;;  %v610_v8 = vrot.slane %v601_v58, %v5596_v62  ;;  %v4996_v58 = vld [vmem:[#allocation5 + $0x1ec] ss:$16 sps:$4 sm:$0xff]  }
 0x11b   :  { %3541 = vmatpush1.bf16.msra.mxu1 %v4891_v9  ;;  %3501 = vmatprep.subr.bf16.mxu0 %v4896_v10 }
 0x11c   :  { %3542 = vmatprep.subr.bf16.mxu1 %v4899_v11  ;;  %v4955_v11 = vld [vmem:[#allocation5 + $0x2c8] ss:$16 sps:$4 sm:$0xff]  }
 0x11e   :  { %3502 = vmatpush2.bf16.msra.mxu0 %v4894_v12 }
 0x11f   :  { %3543 = vmatpush2.bf16.msra.mxu1 %v4897_v13  ;;  %3503 = vmatprep.subr.bf16.mxu0 %v4902_v14  ;;  %v4960_v14 = vld [vmem:[#allocation5 + $0xac] ss:$16 sps:$4 sm:$0xff]  }
 0x120   :  { %3544 = vmatprep.subr.bf16.mxu1 %v4905_v15  ;;  %v4963_v15 = vld [vmem:[#allocation5 + $0x2ac] ss:$16 sps:$4 sm:$0xff]  }
 0x122   :  { %3504 = vmatpush2.bf16.msra.mxu0 %v4900_v18 }
 0x123   :  { %3545 = vmatpush2.bf16.msra.mxu1 %v4903_v19  ;;  %3505 = vmatprep.subr.bf16.mxu0 %v4908_v20 }
 0x124   :  { %3546 = vmatprep.subr.bf16.mxu1 %v4911_v21 }
 0x126   :  { %3506 = vmatpush2.bf16.msra.mxu0 %v4906_v26 }
 0x127   :  { %3547 = vmatpush2.bf16.msra.mxu1 %v4909_v27  ;;  %3507 = vmatprep.subr.bf16.mxu0 %v4914_v28  ;;  %v4958_v27 = vld [vmem:[#allocation5 + $0xa8] ss:$16 sps:$4 sm:$0xff]  }
 0x128   :  { %3548 = vmatprep.subr.bf16.mxu1 %v4917_v29  ;;  %v4961_v28 = vld [vmem:[#allocation5 + $0x2a8] ss:$16 sps:$4 sm:$0xff]  }
 0x12a   :  { %3508 = vmatpush2.bf16.msra.mxu0 %v4912_v30 }
 0x12b   :  { %3549 = vmatpush2.bf16.msra.mxu1 %v4915_v31  ;;  %3509 = vmatprep.subr.bf16.mxu0 %v4920_v32  ;;  %v4966_v31 = vld [vmem:[#allocation5 + $0x8c] ss:$16 sps:$4 sm:$0xff]  }
 0x12c   :  { %3550 = vmatprep.subr.bf16.mxu1 %v4923_v33  ;;  %v4969_v32 = vld [vmem:[#allocation5 + $0x28c] ss:$16 sps:$4 sm:$0xff]   ;;  %v4964_v33 = vld [vmem:[#allocation5 + $0x88] ss:$16 sps:$4 sm:$0xff]  }
 0x12e   :  { %3510 = vmatpush2.bf16.msra.mxu0 %v4918_v40  ;;  %v4975_v40 = vld [vmem:[#allocation5 + $0x26c] ss:$16 sps:$4 sm:$0xff]  }
 0x12f   :  { %3551 = vmatpush2.bf16.msra.mxu1 %v4921_v41  ;;  %3511 = vmatprep.subr.bf16.mxu0 %v4926_v42  ;;  %v4970_v41 = vld [vmem:[#allocation5 + $0x68] ss:$16 sps:$4 sm:$0xff]  }
 0x130   :  { %3552 = vmatprep.subr.bf16.mxu1 %v4929_v43  ;;  %v4973_v42 = vld [vmem:[#allocation5 + $0x268] ss:$16 sps:$4 sm:$0xff]   ;;  %v4978_v43 = vld [vmem:[#allocation5 + $0x4c] ss:$16 sps:$4 sm:$0xff]  }
 0x132   :  { %3512 = vmatpush2.bf16.msra.mxu0 %v4924_v23  ;;  %v4981_v23 = vld [vmem:[#allocation5 + $0x24c] ss:$16 sps:$4 sm:$0xff]  }
 0x133   :  { %3553 = vmatpush2.bf16.msra.mxu1 %v4927_v45  ;;  %3513 = vmatprep.subr.bf16.mxu0 %v4932_v48  ;;  %v4976_v45 = vld [vmem:[#allocation5 + $0x48] ss:$16 sps:$4 sm:$0xff]   ;;  %v4984_v48 = vld [vmem:[#allocation5 + $0x2c] ss:$16 sps:$4 sm:$0xff]  }
 0x134   :  { %3554 = vmatprep.subr.bf16.mxu1 %v4935_v49  ;;  %v4987_v49 = vld [vmem:[#allocation5 + $0x22c] ss:$16 sps:$4 sm:$0xff]  }
 0x136   :  { %3514 = vmatpush2.bf16.msra.mxu0 %v4930_v50  ;;  %v4982_v50 = vld [vmem:[#allocation5 + $0x28] ss:$16 sps:$4 sm:$0xff]  }
 0x137   :  { %3555 = vmatpush2.bf16.msra.mxu1 %v4933_v52  ;;  %3515 = vmatprep.subr.bf16.mxu0 %v4938_v54  ;;  %v4985_v52 = vld [vmem:[#allocation5 + $0x228] ss:$16 sps:$4 sm:$0xff]   ;;  %v4990_v54 = vld [vmem:[#allocation5 + $0xc] ss:$16 sps:$4 sm:$0xff]  }
 0x138   :  { %3556 = vmatprep.subr.bf16.mxu1 %v4941_v55  ;;  %v4993_v55 = vld [vmem:[#allocation5 + $0x20c] ss:$16 sps:$4 sm:$0xff]  }
 0x13a   :  { %3516 = vmatpush2.bf16.msra.mxu0 %v4936_v56  ;;  %v4988_v56 = vld [vmem:[#allocation5 + $0x8] ss:$16 sps:$4 sm:$0xff]  }
 0x13b   :  { %3557 = vmatpush2.bf16.msra.mxu1 %v4939_v57  ;;  %3567 = vmatprep.subr.bf16.mxu0 %v4948_v60  ;;  %v4991_v57 = vld [vmem:[#allocation5 + $0x208] ss:$16 sps:$4 sm:$0xff]   ;;  %v4999_v60 = vld [vmem:[#allocation5 + $0x3ec] ss:$16 sps:$4 sm:$0xff]  }
 0x13c   :  { %3608 = vmatprep.subr.bf16.mxu1 %v4951_v61  ;;  %v4994_v61 = vld [vmem:[#allocation5 + $0x1e8] ss:$16 sps:$4 sm:$0xff]  }
 0x13d   :  { %v3273_v9 = vpop.f32.mrf.mxu0  ;;  %3518 = vmatmul.mubr.bf16.vlgmr.msra.gmra.mxu0 %v5600_v63 }
 0x13e   :  { %v3314_v10 = vpop.f32.mrf.mxu1  ;;  %3559 = vmatmul.mubr.bf16.vlgmr.msra.gmra.mxu1 %v5604_v0  ;;  %v3274_v34 = vadd.f32 %v3273_v9, %v606_v1  ;;  %3568 = vmatpush1.bf16.msra.mxu0 %v4946_v2  ;;  %v4997_v1 = vld [vmem:[#allocation5 + $0x3e8] ss:$16 sps:$4 sm:$0xff]   ;;  %v5002_v2 = vld [vmem:[#allocation5 + $0x1cc] ss:$16 sps:$4 sm:$0xff]  }
 0x13f   :  { %3609 = vmatpush1.bf16.msra.mxu1 %v4949_v3  ;;  %v3275_v12 = vpop.f32.mrf.mxu0  ;;  %3569 = vmatprep.subr.bf16.mxu0 %v4954_v4  ;;  %v5005_v3 = vld [vmem:[#allocation5 + $0x3cc] ss:$16 sps:$4 sm:$0xff]   ;;  %v5000_v4 = vld [vmem:[#allocation5 + $0x1c8] ss:$16 sps:$4 sm:$0xff]  }
 0x140   :  { %v3316_v13 = vpop.f32.mrf.mxu1  ;;  %3610 = vmatprep.subr.bf16.mxu1 %v4957_v5  ;;  %v5610_v18 = vadd.f32 %v3314_v10, %v3274_v34  ;;  %v3276_v19 = vadd.f32 %v3275_v12, %v610_v8  ;;  %3599 = vmatprep.mubr.bf16.mxu0 %v5516_v47  ;;  %v4967_v47 = vld [vmem:[#allocation5 + $0x288] ss:$16 sps:$4 sm:$0xff]   ;;  %v5008_v8 = vld [vmem:[#allocation5 + $0x1ac] ss:$16 sps:$4 sm:$0xff]  }
 0x141   :  { %3640 = vmatprep.mubr.bf16.mxu1 %v5518_v51  ;;  %v3277_v20 = vpop.f32.mrf.mxu0  ;;  %v4972_v51 = vld [vmem:[#allocation5 + $0x6c] ss:$16 sps:$4 sm:$0xff]   ;;  %v5003_v5 = vld [vmem:[#allocation5 + $0x3c8] ss:$16 sps:$4 sm:$0xff]  }
 0x142   :  { %v3318_v21 = vpop.f32.mrf.mxu1  ;;  %v5614_v26 = vadd.f32 %v3316_v13, %v3276_v19  ;;  %3570 = vmatpush1.bf16.msra.mxu0 %v4952_v39  ;;  %v5011_v9 = vld [vmem:[#allocation5 + $0x3ac] ss:$16 sps:$4 sm:$0xff]   ;;  %v5006_v10 = vld [vmem:[#allocation5 + $0x1a8] ss:$16 sps:$4 sm:$0xff]  }
 0x143   :  { %3611 = vmatpush1.bf16.msra.mxu1 %v4955_v11  ;;  %v3278_v29 = vpop.f32.mrf.mxu0  ;;  %3571 = vmatprep.subr.bf16.mxu0 %v4960_v14  ;;  %v5009_v34 = vld [vmem:[#allocation5 + $0x3a8] ss:$16 sps:$4 sm:$0xff]   ;;  %v5014_v39 = vld [vmem:[#allocation5 + $0x18c] ss:$16 sps:$4 sm:$0xff]  }
 0x144   :  { %v3319_v30 = vpop.f32.mrf.mxu1  ;;  %3612 = vmatprep.subr.bf16.mxu1 %v4963_v15  ;;  %v5017_v11 = vld [vmem:[#allocation5 + $0x38c] ss:$16 sps:$4 sm:$0xff]   ;;  %v5012_v12 = vld [vmem:[#allocation5 + $0x188] ss:$16 sps:$4 sm:$0xff]  }
 0x145   :  { %v5015_v13 = vld [vmem:[#allocation5 + $0x388] ss:$16 sps:$4 sm:$0xff]   ;;  %v5020_v14 = vld [vmem:[#allocation5 + $0x16c] ss:$16 sps:$4 sm:$0xff]  }
 0x146   :  { %3572 = vmatpush1.bf16.msra.mxu0 %v4958_v27  ;;  %v5023_v15 = vld [vmem:[#allocation5 + $0x36c] ss:$16 sps:$4 sm:$0xff]   ;;  %v5018_v19 = vld [vmem:[#allocation5 + $0x168] ss:$16 sps:$4 sm:$0xff]  }
 0x147   :  { %3613 = vmatpush1.bf16.msra.mxu1 %v4961_v28  ;;  %3573 = vmatprep.subr.bf16.mxu0 %v4966_v31  ;;  %v5021_v20 = vld [vmem:[#allocation5 + $0x368] ss:$16 sps:$4 sm:$0xff]   ;;  %v5026_v21 = vld [vmem:[#allocation5 + $0x14c] ss:$16 sps:$4 sm:$0xff]  }
 0x148   :  { %3614 = vmatprep.subr.bf16.mxu1 %v4969_v32  ;;  %v5029_v27 = vld [vmem:[#allocation5 + $0x34c] ss:$16 sps:$4 sm:$0xff]   ;;  %v5024_v28 = vld [vmem:[#allocation5 + $0x148] ss:$16 sps:$4 sm:$0xff]  }
 0x149   :  { %v5027_v29 = vld [vmem:[#allocation5 + $0x348] ss:$16 sps:$4 sm:$0xff]   ;;  %v5032_v30 = vld [vmem:[#allocation5 + $0x12c] ss:$16 sps:$4 sm:$0xff]  }
 0x14a   :  { %3574 = vmatpush1.bf16.msra.mxu0 %v4964_v33  ;;  %v5035_v31 = vld [vmem:[#allocation5 + $0x32c] ss:$16 sps:$4 sm:$0xff]   ;;  %v5030_v32 = vld [vmem:[#allocation5 + $0x128] ss:$16 sps:$4 sm:$0xff]  }
 0x14b   :  { %3615 = vmatpush1.bf16.msra.mxu1 %v4967_v47  ;;  %3575 = vmatprep.subr.bf16.mxu0 %v4972_v51  ;;  %v5033_v33 = vld [vmem:[#allocation5 + $0x328] ss:$16 sps:$4 sm:$0xff]   ;;  %v5038_v47 = vld [vmem:[#allocation5 + $0x10c] ss:$16 sps:$4 sm:$0xff]  }
 0x14c   :  { %3616 = vmatprep.subr.bf16.mxu1 %v4975_v40  ;;  %v5041_v51 = vld [vmem:[#allocation5 + $0x30c] ss:$16 sps:$4 sm:$0xff]   ;;  %v5036_v40 = vld [vmem:[#allocation5 + $0x108] ss:$16 sps:$4 sm:$0xff]  }
 0x14e   :  { %3576 = vmatpush1.bf16.msra.mxu0 %v4970_v41  ;;  %v5039_v41 = vld [vmem:[#allocation5 + $0x308] ss:$16 sps:$4 sm:$0xff]  }
 0x14f   :  { %3617 = vmatpush1.bf16.msra.mxu1 %v4973_v42  ;;  %3577 = vmatprep.subr.bf16.mxu0 %v4978_v43  ;;  %v5044_v42 = vld [vmem:[#allocation5 + $0x4ec] ss:$16 sps:$4 sm:$0xff]  }
 0x150   :  { %3618 = vmatprep.subr.bf16.mxu1 %v4981_v23  ;;  %v5047_v43 = vld [vmem:[#allocation5 + $0x6ec] ss:$16 sps:$4 sm:$0xff]   ;;  %v5042_v23 = vld [vmem:[#allocation5 + $0x4e8] ss:$16 sps:$4 sm:$0xff]  }
 0x152   :  { %3578 = vmatpush1.bf16.msra.mxu0 %v4976_v45  ;;  %v5045_v45 = vld [vmem:[#allocation5 + $0x6e8] ss:$16 sps:$4 sm:$0xff]  }
 0x153   :  { %3619 = vmatpush1.bf16.msra.mxu1 %v4979_v46  ;;  %3579 = vmatprep.subr.bf16.mxu0 %v4984_v48  ;;  %v5050_v46 = vld [vmem:[#allocation5 + $0x4cc] ss:$16 sps:$4 sm:$0xff]  }
 0x154   :  { %3620 = vmatprep.subr.bf16.mxu1 %v4987_v49  ;;  %v5053_v48 = vld [vmem:[#allocation5 + $0x6cc] ss:$16 sps:$4 sm:$0xff]   ;;  %v5048_v49 = vld [vmem:[#allocation5 + $0x4c8] ss:$16 sps:$4 sm:$0xff]  }
 0x156   :  { %3580 = vmatpush1.bf16.msra.mxu0 %v4982_v50 }
 0x157   :  { %3621 = vmatpush1.bf16.msra.mxu1 %v4985_v52  ;;  %3581 = vmatprep.subr.bf16.mxu0 %v4990_v54 }
 0x158   :  { %3622 = vmatprep.subr.bf16.mxu1 %v4993_v55  ;;  %v5051_v55 = vld [vmem:[#allocation5 + $0x6c8] ss:$16 sps:$4 sm:$0xff]  }
 0x15a   :  { %3582 = vmatpush1.bf16.msra.mxu0 %v4988_v56 }
 0x15b   :  { %3623 = vmatpush1.bf16.msra.mxu1 %v4991_v57  ;;  %3583 = vmatprep.subr.bf16.mxu0 %v4996_v58  ;;  %v5056_v58 = vld [vmem:[#allocation5 + $0x4ac] ss:$16 sps:$4 sm:$0xff]  }
 0x15c   :  { %3624 = vmatprep.subr.bf16.mxu1 %v4999_v60  ;;  %v5059_v60 = vld [vmem:[#allocation5 + $0x6ac] ss:$16 sps:$4 sm:$0xff]  }
 0x15e   :  { %3584 = vmatpush2.bf16.msra.mxu0 %v4994_v61 }
 0x15f   :  { %3625 = vmatpush2.bf16.msra.mxu1 %v4997_v1  ;;  %3585 = vmatprep.subr.bf16.mxu0 %v5002_v2  ;;  %v5054_v2 = vld [vmem:[#allocation5 + $0x4a8] ss:$16 sps:$4 sm:$0xff]  }
 0x160   :  { %3626 = vmatprep.subr.bf16.mxu1 %v5005_v3  ;;  %v5057_v3 = vld [vmem:[#allocation5 + $0x6a8] ss:$16 sps:$4 sm:$0xff]  }
 0x162   :  { %3586 = vmatpush2.bf16.msra.mxu0 %v5000_v4 }
 0x163   :  { %3627 = vmatpush2.bf16.msra.mxu1 %v5003_v5  ;;  %3587 = vmatprep.subr.bf16.mxu0 %v5008_v8  ;;  %v5062_v8 = vld [vmem:[#allocation5 + $0x48c] ss:$16 sps:$4 sm:$0xff]  }
 0x164   :  { %3628 = vmatprep.subr.bf16.mxu1 %v5011_v9  ;;  %v5065_v9 = vld [vmem:[#allocation5 + $0x68c] ss:$16 sps:$4 sm:$0xff]  }
 0x166   :  { %3588 = vmatpush2.bf16.msra.mxu0 %v5006_v10  ;;  %v5071_v10 = vld [vmem:[#allocation5 + $0x66c] ss:$16 sps:$4 sm:$0xff]  }
 0x167   :  { %3629 = vmatpush2.bf16.msra.mxu1 %v5009_v34  ;;  %3589 = vmatprep.subr.bf16.mxu0 %v5014_v39  ;;  %v5066_v34 = vld [vmem:[#allocation5 + $0x468] ss:$16 sps:$4 sm:$0xff]  }
 0x168   :  { %3630 = vmatprep.subr.bf16.mxu1 %v5017_v11  ;;  %v5069_v39 = vld [vmem:[#allocation5 + $0x668] ss:$16 sps:$4 sm:$0xff]   ;;  %v5074_v11 = vld [vmem:[#allocation5 + $0x44c] ss:$16 sps:$4 sm:$0xff]  }
 0x16a   :  { %3590 = vmatpush2.bf16.msra.mxu0 %v5012_v12  ;;  %v5077_v12 = vld [vmem:[#allocation5 + $0x64c] ss:$16 sps:$4 sm:$0xff]  }
 0x16b   :  { %3631 = vmatpush2.bf16.msra.mxu1 %v5015_v13  ;;  %3591 = vmatprep.subr.bf16.mxu0 %v5020_v14  ;;  %v5072_v13 = vld [vmem:[#allocation5 + $0x448] ss:$16 sps:$4 sm:$0xff]  }
 0x16c   :  { %3632 = vmatprep.subr.bf16.mxu1 %v5023_v15  ;;  %v5075_v14 = vld [vmem:[#allocation5 + $0x648] ss:$16 sps:$4 sm:$0xff]   ;;  %v5080_v15 = vld [vmem:[#allocation5 + $0x42c] ss:$16 sps:$4 sm:$0xff]  }
 0x16e   :  { %3592 = vmatpush2.bf16.msra.mxu0 %v5018_v19  ;;  %v5083_v19 = vld [vmem:[#allocation5 + $0x62c] ss:$16 sps:$4 sm:$0xff]  }
 0x16f   :  { %3633 = vmatpush2.bf16.msra.mxu1 %v5021_v20  ;;  %3593 = vmatprep.subr.bf16.mxu0 %v5026_v21  ;;  %v5078_v20 = vld [vmem:[#allocation5 + $0x428] ss:$16 sps:$4 sm:$0xff]  }
 0x170   :  { %3634 = vmatprep.subr.bf16.mxu1 %v5029_v27  ;;  %v5081_v21 = vld [vmem:[#allocation5 + $0x628] ss:$16 sps:$4 sm:$0xff]   ;;  %v5086_v27 = vld [vmem:[#allocation5 + $0x40c] ss:$16 sps:$4 sm:$0xff]  }
 0x172   :  { %3594 = vmatpush2.bf16.msra.mxu0 %v5024_v28  ;;  %v5089_v28 = vld [vmem:[#allocation5 + $0x60c] ss:$16 sps:$4 sm:$0xff]  }
 0x173   :  { %3635 = vmatpush2.bf16.msra.mxu1 %v5027_v29  ;;  %3595 = vmatprep.subr.bf16.mxu0 %v5032_v30  ;;  %v5084_v29 = vld [vmem:[#allocation5 + $0x408] ss:$16 sps:$4 sm:$0xff]  }
 0x174   :  { %3636 = vmatprep.subr.bf16.mxu1 %v5035_v31  ;;  %v5087_v30 = vld [vmem:[#allocation5 + $0x608] ss:$16 sps:$4 sm:$0xff]   ;;  %v5092_v31 = vld [vmem:[#allocation5 + $0x5ec] ss:$16 sps:$4 sm:$0xff]  }
 0x176   :  { %3596 = vmatpush2.bf16.msra.mxu0 %v5030_v32  ;;  %v5095_v32 = vld [vmem:[#allocation5 + $0x7ec] ss:$16 sps:$4 sm:$0xff]  }
 0x177   :  { %3637 = vmatpush2.bf16.msra.mxu1 %v5033_v33  ;;  %3597 = vmatprep.subr.bf16.mxu0 %v5038_v47  ;;  %v5090_v33 = vld [vmem:[#allocation5 + $0x5e8] ss:$16 sps:$4 sm:$0xff]  }
 0x178   :  { %3638 = vmatprep.subr.bf16.mxu1 %v5041_v51  ;;  %v5093_v47 = vld [vmem:[#allocation5 + $0x7e8] ss:$16 sps:$4 sm:$0xff]   ;;  %v5098_v51 = vld [vmem:[#allocation5 + $0x5cc] ss:$16 sps:$4 sm:$0xff]  }
 0x17a   :  { %3598 = vmatpush2.bf16.msra.mxu0 %v5036_v40  ;;  %v5101_v40 = vld [vmem:[#allocation5 + $0x7cc] ss:$16 sps:$4 sm:$0xff]  }
 0x17b   :  { %3639 = vmatpush2.bf16.msra.mxu1 %v5039_v41  ;;  %3649 = vmatprep.subr.bf16.mxu0 %v5044_v42  ;;  %v5096_v41 = vld [vmem:[#allocation5 + $0x5c8] ss:$16 sps:$4 sm:$0xff]  }
 0x17c   :  { %3690 = vmatprep.subr.bf16.mxu1 %v5047_v43  ;;  %v5099_v42 = vld [vmem:[#allocation5 + $0x7c8] ss:$16 sps:$4 sm:$0xff]   ;;  %v5104_v43 = vld [vmem:[#allocation5 + $0x5ac] ss:$16 sps:$4 sm:$0xff]  }
 0x17d   :  { %v3355_v50 = vpop.f32.mrf.mxu0  ;;  %3600 = vmatmul.mubr.bf16.vlgmr.msra.gmra.mxu0 %v5522_v6 }
 0x17e   :  { %v3396_v52 = vpop.f32.mrf.mxu1  ;;  %3641 = vmatmul.mubr.bf16.vlgmr.msra.gmra.mxu1 %v5524_v7  ;;  %v3356_v54 = vadd.f32 %v3355_v50, %v5610_v18  ;;  %3650 = vmatpush1.bf16.msra.mxu0 %v5042_v23  ;;  %v5107_v23 = vld [vmem:[#allocation5 + $0x7ac] ss:$16 sps:$4 sm:$0xff]   ;;  %v5108_v50 = vld [vmem:[#allocation5 + $0x588] ss:$16 sps:$4 sm:$0xff]  }
 0x17f   :  { %3691 = vmatpush1.bf16.msra.mxu1 %v5045_v45  ;;  %v3357_v56 = vpop.f32.mrf.mxu0  ;;  %3651 = vmatprep.subr.bf16.mxu0 %v5050_v46  ;;  %v5102_v45 = vld [vmem:[#allocation5 + $0x5a8] ss:$16 sps:$4 sm:$0xff]  }
 0x180   :  { %v3398_v57 = vpop.f32.mrf.mxu1  ;;  %3692 = vmatprep.subr.bf16.mxu1 %v5053_v48  ;;  %v5619_v61 = vadd.f32 %v3396_v52, %v3356_v54  ;;  %v3358_v1 = vadd.f32 %v3357_v56, %v5614_v26  ;;  %3681 = vmatprep.mubr.bf16.mxu0 %v5534_v36  ;;  %v5060_v26 = vld [vmem:[#allocation5 + $0x488] ss:$16 sps:$4 sm:$0xff]   ;;  %v5110_v48 = vld [vmem:[#allocation5 + $0x58c] ss:$16 sps:$4 sm:$0xff]  }
 0x181   :  { %3722 = vmatprep.mubr.bf16.mxu1 %v5538_v37  ;;  %v3359_v6 = vpop.f32.mrf.mxu0  ;;  %v5063_v36 = vld [vmem:[#allocation5 + $0x688] ss:$16 sps:$4 sm:$0xff]   ;;  %v5068_v37 = vld [vmem:[#allocation5 + $0x46c] ss:$16 sps:$4 sm:$0xff]  }
 0x182   :  { %v3400_v7 = vpop.f32.mrf.mxu1  ;;  %v5624_v18 = vadd.f32 %v3398_v57, %v3358_v1  ;;  %3652 = vmatpush1.bf16.msra.mxu0 %v5048_v49  ;;  %v5105_v46 = vld [vmem:[#allocation5 + $0x7a8] ss:$16 sps:$4 sm:$0xff]   ;;  %v5113_v49 = vld [vmem:[#allocation5 + $0x78c] ss:$16 sps:$4 sm:$0xff]  }
 0x183   :  { %3693 = vmatpush1.bf16.msra.mxu1 %v5051_v55  ;;  %v3360_v4 = vpop.f32.mrf.mxu0  ;;  %3653 = vmatprep.subr.bf16.mxu0 %v5056_v58  ;;  %v5111_v52 = vld [vmem:[#allocation5 + $0x788] ss:$16 sps:$4 sm:$0xff]   ;;  %v5116_v54 = vld [vmem:[#allocation5 + $0x56c] ss:$16 sps:$4 sm:$0xff]  }
 0x184   :  { %v3401_v5 = vpop.f32.mrf.mxu1  ;;  %3694 = vmatprep.subr.bf16.mxu1 %v5059_v60  ;;  %v5119_v55 = vld [vmem:[#allocation5 + $0x76c] ss:$16 sps:$4 sm:$0xff]   ;;  %v5114_v56 = vld [vmem:[#allocation5 + $0x568] ss:$16 sps:$4 sm:$0xff]  }
 0x185   :  { %v5117_v57 = vld [vmem:[#allocation5 + $0x768] ss:$16 sps:$4 sm:$0xff]   ;;  %v5122_v58 = vld [vmem:[#allocation5 + $0x54c] ss:$16 sps:$4 sm:$0xff]  }
 0x186   :  { %3654 = vmatpush1.bf16.msra.mxu0 %v5054_v2  ;;  %v5125_v60 = vld [vmem:[#allocation5 + $0x74c] ss:$16 sps:$4 sm:$0xff]   ;;  %v5120_v1 = vld [vmem:[#allocation5 + $0x548] ss:$16 sps:$4 sm:$0xff]  }
 0x187   :  { %3695 = vmatpush1.bf16.msra.mxu1 %v5057_v3  ;;  %3655 = vmatprep.subr.bf16.mxu0 %v5062_v8  ;;  %v5123_v6 = vld [vmem:[#allocation5 + $0x748] ss:$16 sps:$4 sm:$0xff]   ;;  %v5128_v7 = vld [vmem:[#allocation5 + $0x52c] ss:$16 sps:$4 sm:$0xff]  }
 0x188   :  { %3696 = vmatprep.subr.bf16.mxu1 %v5065_v9  ;;  %v5131_v2 = vld [vmem:[#allocation5 + $0x72c] ss:$16 sps:$4 sm:$0xff]   ;;  %v5126_v3 = vld [vmem:[#allocation5 + $0x528] ss:$16 sps:$4 sm:$0xff]  }
 0x189   :  { %v5129_v4 = vld [vmem:[#allocation5 + $0x728] ss:$16 sps:$4 sm:$0xff]   ;;  %v5134_v5 = vld [vmem:[#allocation5 + $0x50c] ss:$16 sps:$4 sm:$0xff]  }
 0x18a   :  { %3656 = vmatpush1.bf16.msra.mxu0 %v5060_v26  ;;  %v5137_v8 = vld [vmem:[#allocation5 + $0x70c] ss:$16 sps:$4 sm:$0xff]   ;;  %v5132_v9 = vld [vmem:[#allocation5 + $0x508] ss:$16 sps:$4 sm:$0xff]  }
 0x18b   :  { %3697 = vmatpush1.bf16.msra.mxu1 %v5063_v36  ;;  %3657 = vmatprep.subr.bf16.mxu0 %v5068_v37  ;;  %v5135_v26 = vld [vmem:[#allocation5 + $0x708] ss:$16 sps:$4 sm:$0xff]   ;;  %v5140_v36 = vld [vmem:[#allocation5 + $0x8ec] ss:$16 sps:$4 sm:$0xff]  }
 0x18c   :  { %3698 = vmatprep.subr.bf16.mxu1 %v5071_v10  ;;  %v5143_v37 = vld [vmem:[#allocation5 + $0xaec] ss:$16 sps:$4 sm:$0xff]   ;;  %v5138_v10 = vld [vmem:[#allocation5 + $0x8e8] ss:$16 sps:$4 sm:$0xff]  }
 0x18e   :  { %3658 = vmatpush1.bf16.msra.mxu0 %v5066_v34  ;;  %v5141_v34 = vld [vmem:[#allocation5 + $0xae8] ss:$16 sps:$4 sm:$0xff]  }
 0x18f   :  { %3699 = vmatpush1.bf16.msra.mxu1 %v5069_v39  ;;  %3659 = vmatprep.subr.bf16.mxu0 %v5074_v11  ;;  %v5146_v39 = vld [vmem:[#allocation5 + $0x8cc] ss:$16 sps:$4 sm:$0xff]  }
 0x190   :  { %3700 = vmatprep.subr.bf16.mxu1 %v5077_v12  ;;  %v5149_v11 = vld [vmem:[#allocation5 + $0xacc] ss:$16 sps:$4 sm:$0xff]  }
 0x192   :  { %3660 = vmatpush1.bf16.msra.mxu0 %v5072_v13 }
 0x193   :  { %3701 = vmatpush1.bf16.msra.mxu1 %v5075_v14  ;;  %3661 = vmatprep.subr.bf16.mxu0 %v5080_v15  ;;  %v5144_v15 = vld [vmem:[#allocation5 + $0x8c8] ss:$16 sps:$4 sm:$0xff]  }
 0x194   :  { %3702 = vmatprep.subr.bf16.mxu1 %v5083_v19  ;;  %v5147_v19 = vld [vmem:[#allocation5 + $0xac8] ss:$16 sps:$4 sm:$0xff]  }
 0x196   :  { %3662 = vmatpush1.bf16.msra.mxu0 %v5078_v20 }
 0x197   :  { %3703 = vmatpush1.bf16.msra.mxu1 %v5081_v21  ;;  %3663 = vmatprep.subr.bf16.mxu0 %v5086_v27  ;;  %v5152_v27 = vld [vmem:[#allocation5 + $0x8ac] ss:$16 sps:$4 sm:$0xff]  }
 0x198   :  { %3704 = vmatprep.subr.bf16.mxu1 %v5089_v28  ;;  %v5155_v28 = vld [vmem:[#allocation5 + $0xaac] ss:$16 sps:$4 sm:$0xff]  }
 0x19a   :  { %3664 = vmatpush1.bf16.msra.mxu0 %v5084_v29 }
 0x19b   :  { %3705 = vmatpush1.bf16.msra.mxu1 %v5087_v30  ;;  %3665 = vmatprep.subr.bf16.mxu0 %v5092_v31  ;;  %v5150_v31 = vld [vmem:[#allocation5 + $0x8a8] ss:$16 sps:$4 sm:$0xff]  }
 0x19c   :  { %3706 = vmatprep.subr.bf16.mxu1 %v5095_v32  ;;  %v5153_v32 = vld [vmem:[#allocation5 + $0xaa8] ss:$16 sps:$4 sm:$0xff]  }
 0x19e   :  { %3666 = vmatpush2.bf16.msra.mxu0 %v5090_v33 }
 0x19f   :  { %3707 = vmatpush2.bf16.msra.mxu1 %v5093_v47  ;;  %3667 = vmatprep.subr.bf16.mxu0 %v5098_v51  ;;  %v5158_v51 = vld [vmem:[#allocation5 + $0x88c] ss:$16 sps:$4 sm:$0xff]  }
 0x1a0   :  { %3708 = vmatprep.subr.bf16.mxu1 %v5101_v40  ;;  %v5161_v40 = vld [vmem:[#allocation5 + $0xa8c] ss:$16 sps:$4 sm:$0xff]  }
 0x1a2   :  { %3668 = vmatpush2.bf16.msra.mxu0 %v5096_v41  ;;  %v5167_v41 = vld [vmem:[#allocation5 + $0xa6c] ss:$16 sps:$4 sm:$0xff]  }
 0x1a3   :  { %3709 = vmatpush2.bf16.msra.mxu1 %v5099_v42  ;;  %3669 = vmatprep.subr.bf16.mxu0 %v5104_v43  ;;  %v5162_v42 = vld [vmem:[#allocation5 + $0x868] ss:$16 sps:$4 sm:$0xff]  }
 0x1a4   :  { %3710 = vmatprep.subr.bf16.mxu1 %v5107_v23  ;;  %v5165_v43 = vld [vmem:[#allocation5 + $0xa68] ss:$16 sps:$4 sm:$0xff]   ;;  %v5170_v23 = vld [vmem:[#allocation5 + $0x84c] ss:$16 sps:$4 sm:$0xff]  }
 0x1a6   :  { %3670 = vmatpush2.bf16.msra.mxu0 %v5102_v45  ;;  %v5173_v45 = vld [vmem:[#allocation5 + $0xa4c] ss:$16 sps:$4 sm:$0xff]  }
 0x1a7   :  { %3711 = vmatpush2.bf16.msra.mxu1 %v5105_v46  ;;  %3671 = vmatprep.subr.bf16.mxu0 %v5110_v48  ;;  %v5168_v46 = vld [vmem:[#allocation5 + $0x848] ss:$16 sps:$4 sm:$0xff]  }
 0x1a8   :  { %3712 = vmatprep.subr.bf16.mxu1 %v5113_v49  ;;  %v5171_v48 = vld [vmem:[#allocation5 + $0xa48] ss:$16 sps:$4 sm:$0xff]   ;;  %v5176_v49 = vld [vmem:[#allocation5 + $0x82c] ss:$16 sps:$4 sm:$0xff]  }
 0x1aa   :  { %3672 = vmatpush2.bf16.msra.mxu0 %v5108_v50  ;;  %v5179_v50 = vld [vmem:[#allocation5 + $0xa2c] ss:$16 sps:$4 sm:$0xff]  }
 0x1ab   :  { %3713 = vmatpush2.bf16.msra.mxu1 %v5111_v52  ;;  %3673 = vmatprep.subr.bf16.mxu0 %v5116_v54  ;;  %v5174_v52 = vld [vmem:[#allocation5 + $0x828] ss:$16 sps:$4 sm:$0xff]  }
 0x1ac   :  { %3714 = vmatprep.subr.bf16.mxu1 %v5119_v55  ;;  %v5177_v54 = vld [vmem:[#allocation5 + $0xa28] ss:$16 sps:$4 sm:$0xff]   ;;  %v5182_v55 = vld [vmem:[#allocation5 + $0x80c] ss:$16 sps:$4 sm:$0xff]  }
 0x1ae   :  { %3674 = vmatpush2.bf16.msra.mxu0 %v5114_v56  ;;  %v5185_v56 = vld [vmem:[#allocation5 + $0xa0c] ss:$16 sps:$4 sm:$0xff]  }
 0x1af   :  { %3715 = vmatpush2.bf16.msra.mxu1 %v5117_v57  ;;  %3675 = vmatprep.subr.bf16.mxu0 %v5122_v58  ;;  %v5180_v57 = vld [vmem:[#allocation5 + $0x808] ss:$16 sps:$4 sm:$0xff]  }
 0x1b0   :  { %3716 = vmatprep.subr.bf16.mxu1 %v5125_v60  ;;  %v5183_v58 = vld [vmem:[#allocation5 + $0xa08] ss:$16 sps:$4 sm:$0xff]   ;;  %v5188_v60 = vld [vmem:[#allocation5 + $0x9ec] ss:$16 sps:$4 sm:$0xff]  }
 0x1b2   :  { %3676 = vmatpush2.bf16.msra.mxu0 %v5120_v1  ;;  %v5191_v1 = vld [vmem:[#allocation5 + $0xbec] ss:$16 sps:$4 sm:$0xff]  }
 0x1b3   :  { %3717 = vmatpush2.bf16.msra.mxu1 %v5123_v6  ;;  %3677 = vmatprep.subr.bf16.mxu0 %v5128_v7  ;;  %v5186_v6 = vld [vmem:[#allocation5 + $0x9e8] ss:$16 sps:$4 sm:$0xff]  }
 0x1b4   :  { %3718 = vmatprep.subr.bf16.mxu1 %v5131_v2  ;;  %v5189_v7 = vld [vmem:[#allocation5 + $0xbe8] ss:$16 sps:$4 sm:$0xff]   ;;  %v5194_v2 = vld [vmem:[#allocation5 + $0x9cc] ss:$16 sps:$4 sm:$0xff]  }
 0x1b6   :  { %3678 = vmatpush2.bf16.msra.mxu0 %v5126_v3  ;;  %v5197_v3 = vld [vmem:[#allocation5 + $0xbcc] ss:$16 sps:$4 sm:$0xff]  }
 0x1b7   :  { %3719 = vmatpush2.bf16.msra.mxu1 %v5129_v4  ;;  %3679 = vmatprep.subr.bf16.mxu0 %v5134_v5  ;;  %v5192_v4 = vld [vmem:[#allocation5 + $0x9c8] ss:$16 sps:$4 sm:$0xff]  }
 0x1b8   :  { %3720 = vmatprep.subr.bf16.mxu1 %v5137_v8  ;;  %v5195_v5 = vld [vmem:[#allocation5 + $0xbc8] ss:$16 sps:$4 sm:$0xff]   ;;  %v5200_v8 = vld [vmem:[#allocation5 + $0x9ac] ss:$16 sps:$4 sm:$0xff]  }
 0x1ba   :  { %3680 = vmatpush2.bf16.msra.mxu0 %v5132_v9  ;;  %v5203_v9 = vld [vmem:[#allocation5 + $0xbac] ss:$16 sps:$4 sm:$0xff]  }
 0x1bb   :  { %3721 = vmatpush2.bf16.msra.mxu1 %v5135_v26  ;;  %3731 = vmatprep.subr.bf16.mxu0 %v5140_v36  ;;  %v5198_v26 = vld [vmem:[#allocation5 + $0x9a8] ss:$16 sps:$4 sm:$0xff]  }
 0x1bc   :  { %3772 = vmatprep.subr.bf16.mxu1 %v5143_v37  ;;  %v5201_v36 = vld [vmem:[#allocation5 + $0xba8] ss:$16 sps:$4 sm:$0xff]   ;;  %v5206_v37 = vld [vmem:[#allocation5 + $0x98c] ss:$16 sps:$4 sm:$0xff]  }
 0x1bd   :  { %v3437_v12 = vpop.f32.mrf.mxu0  ;;  %3682 = vmatmul.mubr.bf16.vlgmr.msra.gmra.mxu0 %v5544_v16 }
 0x1be   :  { %v3478_v13 = vpop.f32.mrf.mxu1  ;;  %3723 = vmatmul.mubr.bf16.vlgmr.msra.gmra.mxu1 %v5548_v17  ;;  %v3438_v14 = vadd.f32 %v3437_v12, %v5619_v61  ;;  %3732 = vmatpush1.bf16.msra.mxu0 %v5138_v10  ;;  %v5209_v10 = vld [vmem:[#allocation5 + $0xb8c] ss:$16 sps:$4 sm:$0xff]  }
 0x1bf   :  { %3773 = vmatpush1.bf16.msra.mxu1 %v5141_v34  ;;  %v3439_v20 = vpop.f32.mrf.mxu0  ;;  %3733 = vmatprep.subr.bf16.mxu0 %v5146_v39  ;;  %v5204_v34 = vld [vmem:[#allocation5 + $0x988] ss:$16 sps:$4 sm:$0xff]   ;;  %v5215_v12 = vld [vmem:[#allocation5 + $0xb6c] ss:$16 sps:$4 sm:$0xff]  }
 0x1c0   :  { %v3480_v21 = vpop.f32.mrf.mxu1  ;;  %3774 = vmatprep.subr.bf16.mxu1 %v5149_v11  ;;  %v5629_v29 = vadd.f32 %v3478_v13, %v3438_v14  ;;  %v3440_v30 = vadd.f32 %v3439_v20, %v5624_v18  ;;  %3763 = vmatprep.mubr.bf16.mxu0 %v5556_v24  ;;  %v5156_v18 = vld [vmem:[#allocation5 + $0x888] ss:$16 sps:$4 sm:$0xff]   ;;  %v5212_v11 = vld [vmem:[#allocation5 + $0x96c] ss:$16 sps:$4 sm:$0xff]  }
 0x1c1   :  { %3804 = vmatprep.mubr.bf16.mxu1 %v5560_v25  ;;  %v3441_v16 = vpop.f32.mrf.mxu0  ;;  %v5159_v24 = vld [vmem:[#allocation5 + $0xa88] ss:$16 sps:$4 sm:$0xff]   ;;  %v5164_v25 = vld [vmem:[#allocation5 + $0x86c] ss:$16 sps:$4 sm:$0xff]  }
 0x1c2   :  { %v3482_v17 = vpop.f32.mrf.mxu1  ;;  %v5634_v61 = vadd.f32 %v3480_v21, %v3440_v30  ;;  %3734 = vmatpush1.bf16.msra.mxu0 %v5144_v15  ;;  %v5207_v39 = vld [vmem:[#allocation5 + $0xb88] ss:$16 sps:$4 sm:$0xff]   ;;  %v5218_v15 = vld [vmem:[#allocation5 + $0x94c] ss:$16 sps:$4 sm:$0xff]  }
 0x1c3   :  { %3775 = vmatpush1.bf16.msra.mxu1 %v5147_v19  ;;  %v3442_v33 = vpop.f32.mrf.mxu0  ;;  %3735 = vmatprep.subr.bf16.mxu0 %v5152_v27  ;;  %v5210_v13 = vld [vmem:[#allocation5 + $0x968] ss:$16 sps:$4 sm:$0xff]   ;;  %v5221_v19 = vld [vmem:[#allocation5 + $0xb4c] ss:$16 sps:$4 sm:$0xff]  }
 0x1c4   :  { %v3483_v47 = vpop.f32.mrf.mxu1  ;;  %3776 = vmatprep.subr.bf16.mxu1 %v5155_v28  ;;  %v5213_v14 = vld [vmem:[#allocation5 + $0xb68] ss:$16 sps:$4 sm:$0xff]   ;;  %v5224_v27 = vld [vmem:[#allocation5 + $0x92c] ss:$16 sps:$4 sm:$0xff]  }
 0x1c5   :  { %v5216_v20 = vld [vmem:[#allocation5 + $0x948] ss:$16 sps:$4 sm:$0xff]   ;;  %v5227_v28 = vld [vmem:[#allocation5 + $0xb2c] ss:$16 sps:$4 sm:$0xff]  }
 0x1c6   :  { %3736 = vmatpush1.bf16.msra.mxu0 %v5150_v31  ;;  %v5219_v21 = vld [vmem:[#allocation5 + $0xb48] ss:$16 sps:$4 sm:$0xff]   ;;  %v5230_v17 = vld [vmem:[#allocation5 + $0x90c] ss:$16 sps:$4 sm:$0xff]  }
 0x1c7   :  { %3777 = vmatpush1.bf16.msra.mxu1 %v5153_v32  ;;  %3737 = vmatprep.subr.bf16.mxu0 %v5158_v51  ;;  %v5222_v30 = vld [vmem:[#allocation5 + $0x928] ss:$16 sps:$4 sm:$0xff]   ;;  %v5233_v31 = vld [vmem:[#allocation5 + $0xb0c] ss:$16 sps:$4 sm:$0xff]  }
 0x1c8   :  { %3778 = vmatprep.subr.bf16.mxu1 %v5161_v40  ;;  %v5225_v16 = vld [vmem:[#allocation5 + $0xb28] ss:$16 sps:$4 sm:$0xff]   ;;  %v5236_v47 = vld [vmem:[#allocation5 + $0xcec] ss:$16 sps:$4 sm:$0xff]  }
 0x1c9   :  { %v5228_v32 = vld [vmem:[#allocation5 + $0x908] ss:$16 sps:$4 sm:$0xff]   ;;  %v5239_v51 = vld [vmem:[#allocation5 + $0xeec] ss:$16 sps:$4 sm:$0xff]  }
 0x1ca   :  { %3738 = vmatpush1.bf16.msra.mxu0 %v5156_v18  ;;  %v5231_v33 = vld [vmem:[#allocation5 + $0xb08] ss:$16 sps:$4 sm:$0xff]  }
 0x1cb   :  { %3779 = vmatpush1.bf16.msra.mxu1 %v5159_v24  ;;  %3739 = vmatprep.subr.bf16.mxu0 %v5164_v25  ;;  %v5234_v40 = vld [vmem:[#allocation5 + $0xce8] ss:$16 sps:$4 sm:$0xff]   ;;  %v5242_v24 = vld [vmem:[#allocation5 + $0xccc] ss:$16 sps:$4 sm:$0xff]  }
 0x1cc   :  { %3780 = vmatprep.subr.bf16.mxu1 %v5167_v41  ;;  %v5237_v18 = vld [vmem:[#allocation5 + $0xee8] ss:$16 sps:$4 sm:$0xff]   ;;  %v5245_v25 = vld [vmem:[#allocation5 + $0xecc] ss:$16 sps:$4 sm:$0xff]  }
 0x1ce   :  { %3740 = vmatpush1.bf16.msra.mxu0 %v5162_v42 }
 0x1cf   :  { %3781 = vmatpush1.bf16.msra.mxu1 %v5165_v43  ;;  %3741 = vmatprep.subr.bf16.mxu0 %v5170_v23  ;;  %v5240_v23 = vld [vmem:[#allocation5 + $0xcc8] ss:$16 sps:$4 sm:$0xff]  }
 0x1d0   :  { %3782 = vmatprep.subr.bf16.mxu1 %v5173_v45  ;;  %v5243_v45 = vld [vmem:[#allocation5 + $0xec8] ss:$16 sps:$4 sm:$0xff]  }
 0x1d2   :  { %3742 = vmatpush1.bf16.msra.mxu0 %v5168_v46 }
 0x1d3   :  { %3783 = vmatpush1.bf16.msra.mxu1 %v5171_v48  ;;  %3743 = vmatprep.subr.bf16.mxu0 %v5176_v49  ;;  %v5248_v49 = vld [vmem:[#allocation5 + $0xcac] ss:$16 sps:$4 sm:$0xff]  }
 0x1d4   :  { %3784 = vmatprep.subr.bf16.mxu1 %v5179_v50  ;;  %v5251_v50 = vld [vmem:[#allocation5 + $0xeac] ss:$16 sps:$4 sm:$0xff]  }
 0x1d6   :  { %3744 = vmatpush1.bf16.msra.mxu0 %v5174_v52 }
 0x1d7   :  { %3785 = vmatpush1.bf16.msra.mxu1 %v5177_v54  ;;  %3745 = vmatprep.subr.bf16.mxu0 %v5182_v55  ;;  %v5246_v55 = vld [vmem:[#allocation5 + $0xca8] ss:$16 sps:$4 sm:$0xff]  }
 0x1d8   :  { %3786 = vmatprep.subr.bf16.mxu1 %v5185_v56  ;;  %v5249_v56 = vld [vmem:[#allocation5 + $0xea8] ss:$16 sps:$4 sm:$0xff]  }
 0x1da   :  { %3746 = vmatpush1.bf16.msra.mxu0 %v5180_v57 }
 0x1db   :  { %3787 = vmatpush1.bf16.msra.mxu1 %v5183_v58  ;;  %3747 = vmatprep.subr.bf16.mxu0 %v5188_v60  ;;  %v5254_v60 = vld [vmem:[#allocation5 + $0xc8c] ss:$16 sps:$4 sm:$0xff]  }
 0x1dc   :  { %3788 = vmatprep.subr.bf16.mxu1 %v5191_v1  ;;  %v5257_v1 = vld [vmem:[#allocation5 + $0xe8c] ss:$16 sps:$4 sm:$0xff]  }
 0x1de   :  { %3748 = vmatpush2.bf16.msra.mxu0 %v5186_v6  ;;  %v5263_v6 = vld [vmem:[#allocation5 + $0xe6c] ss:$16 sps:$4 sm:$0xff]  }
 0x1df   :  { %3789 = vmatpush2.bf16.msra.mxu1 %v5189_v7  ;;  %3749 = vmatprep.subr.bf16.mxu0 %v5194_v2  ;;  %v5258_v7 = vld [vmem:[#allocation5 + $0xc68] ss:$16 sps:$4 sm:$0xff]  }
 0x1e0   :  { %3790 = vmatprep.subr.bf16.mxu1 %v5197_v3  ;;  %v5261_v2 = vld [vmem:[#allocation5 + $0xe68] ss:$16 sps:$4 sm:$0xff]   ;;  %v5266_v3 = vld [vmem:[#allocation5 + $0xc4c] ss:$16 sps:$4 sm:$0xff]  }
 0x1e2   :  { %3750 = vmatpush2.bf16.msra.mxu0 %v5192_v4  ;;  %v5269_v4 = vld [vmem:[#allocation5 + $0xe4c] ss:$16 sps:$4 sm:$0xff]  }
 0x1e3   :  { %3791 = vmatpush2.bf16.msra.mxu1 %v5195_v5  ;;  %3751 = vmatprep.subr.bf16.mxu0 %v5200_v8  ;;  %v5264_v5 = vld [vmem:[#allocation5 + $0xc48] ss:$16 sps:$4 sm:$0xff]  }
 0x1e4   :  { %3792 = vmatprep.subr.bf16.mxu1 %v5203_v9  ;;  %v5267_v8 = vld [vmem:[#allocation5 + $0xe48] ss:$16 sps:$4 sm:$0xff]   ;;  %v5272_v9 = vld [vmem:[#allocation5 + $0xc2c] ss:$16 sps:$4 sm:$0xff]  }
 0x1e6   :  { %3752 = vmatpush2.bf16.msra.mxu0 %v5198_v26  ;;  %v5275_v26 = vld [vmem:[#allocation5 + $0xe2c] ss:$16 sps:$4 sm:$0xff]  }
 0x1e7   :  { %3793 = vmatpush2.bf16.msra.mxu1 %v5201_v36  ;;  %3753 = vmatprep.subr.bf16.mxu0 %v5206_v37  ;;  %v5270_v36 = vld [vmem:[#allocation5 + $0xc28] ss:$16 sps:$4 sm:$0xff]  }
 0x1e8   :  { %3794 = vmatprep.subr.bf16.mxu1 %v5209_v10  ;;  %v5273_v37 = vld [vmem:[#allocation5 + $0xe28] ss:$16 sps:$4 sm:$0xff]   ;;  %v5278_v10 = vld [vmem:[#allocation5 + $0xc0c] ss:$16 sps:$4 sm:$0xff]  }
 0x1ea   :  { %3754 = vmatpush2.bf16.msra.mxu0 %v5204_v34  ;;  %v5281_v34 = vld [vmem:[#allocation5 + $0xe0c] ss:$16 sps:$4 sm:$0xff]  }
 0x1eb   :  { %3795 = vmatpush2.bf16.msra.mxu1 %v5207_v39  ;;  %3755 = vmatprep.subr.bf16.mxu0 %v5212_v11  ;;  %v5276_v39 = vld [vmem:[#allocation5 + $0xc08] ss:$16 sps:$4 sm:$0xff]  }
 0x1ec   :  { %3796 = vmatprep.subr.bf16.mxu1 %v5215_v12  ;;  %v5279_v11 = vld [vmem:[#allocation5 + $0xe08] ss:$16 sps:$4 sm:$0xff]   ;;  %v5284_v12 = vld [vmem:[#allocation5 + $0xdec] ss:$16 sps:$4 sm:$0xff]  }
 0x1ee   :  { %3756 = vmatpush2.bf16.msra.mxu0 %v5210_v13  ;;  %v5287_v13 = vld [vmem:[#allocation5 + $0xfec] ss:$16 sps:$4 sm:$0xff]  }
 0x1ef   :  { %3797 = vmatpush2.bf16.msra.mxu1 %v5213_v14  ;;  %3757 = vmatprep.subr.bf16.mxu0 %v5218_v15  ;;  %v5282_v14 = vld [vmem:[#allocation5 + $0xde8] ss:$16 sps:$4 sm:$0xff]  }
 0x1f0   :  { %3798 = vmatprep.subr.bf16.mxu1 %v5221_v19  ;;  %v5285_v15 = vld [vmem:[#allocation5 + $0xfe8] ss:$16 sps:$4 sm:$0xff]   ;;  %v5290_v19 = vld [vmem:[#allocation5 + $0xdcc] ss:$16 sps:$4 sm:$0xff]  }
 0x1f2   :  { %3758 = vmatpush2.bf16.msra.mxu0 %v5216_v20  ;;  %v5293_v20 = vld [vmem:[#allocation5 + $0xfcc] ss:$16 sps:$4 sm:$0xff]  }
 0x1f3   :  { %3799 = vmatpush2.bf16.msra.mxu1 %v5219_v21  ;;  %3759 = vmatprep.subr.bf16.mxu0 %v5224_v27  ;;  %v5288_v21 = vld [vmem:[#allocation5 + $0xdc8] ss:$16 sps:$4 sm:$0xff]  }
 0x1f4   :  { %3800 = vmatprep.subr.bf16.mxu1 %v5227_v28  ;;  %v5291_v27 = vld [vmem:[#allocation5 + $0xfc8] ss:$16 sps:$4 sm:$0xff]   ;;  %v5296_v28 = vld [vmem:[#allocation5 + $0xdac] ss:$16 sps:$4 sm:$0xff]  }
 0x1f6   :  { %3760 = vmatpush2.bf16.msra.mxu0 %v5222_v30  ;;  %v5299_v30 = vld [vmem:[#allocation5 + $0xfac] ss:$16 sps:$4 sm:$0xff]  }
 0x1f7   :  { %3801 = vmatpush2.bf16.msra.mxu1 %v5225_v16  ;;  %3761 = vmatprep.subr.bf16.mxu0 %v5230_v17  ;;  %v5294_v16 = vld [vmem:[#allocation5 + $0xda8] ss:$16 sps:$4 sm:$0xff]  }
 0x1f8   :  { %3802 = vmatprep.subr.bf16.mxu1 %v5233_v31  ;;  %v5297_v17 = vld [vmem:[#allocation5 + $0xfa8] ss:$16 sps:$4 sm:$0xff]   ;;  %v5302_v31 = vld [vmem:[#allocation5 + $0xd8c] ss:$16 sps:$4 sm:$0xff]  }
 0x1fa   :  { %3762 = vmatpush2.bf16.msra.mxu0 %v5228_v32  ;;  %v5305_v32 = vld [vmem:[#allocation5 + $0xf8c] ss:$16 sps:$4 sm:$0xff]  }
 0x1fb   :  { %3803 = vmatpush2.bf16.msra.mxu1 %v5231_v33  ;;  %3813 = vmatprep.subr.bf16.mxu0 %v5236_v47  ;;  %v5300_v33 = vld [vmem:[#allocation5 + $0xd88] ss:$16 sps:$4 sm:$0xff]  }
 0x1fc   :  { %3854 = vmatprep.subr.bf16.mxu1 %v5239_v51  ;;  %v5303_v47 = vld [vmem:[#allocation5 + $0xf88] ss:$16 sps:$4 sm:$0xff]   ;;  %v5308_v51 = vld [vmem:[#allocation5 + $0xd6c] ss:$16 sps:$4 sm:$0xff]  }
 0x1fd   :  { %v3519_v41 = vpop.f32.mrf.mxu0  ;;  %3764 = vmatmul.mubr.bf16.vlgmr.msra.gmra.mxu0 %v5570_v35 }
 0x1fe   :  { %v3560_v42 = vpop.f32.mrf.mxu1  ;;  %3805 = vmatmul.mubr.bf16.vlgmr.msra.gmra.mxu1 %v5574_v38  ;;  %v3520_v43 = vadd.f32 %v3519_v41, %v5629_v29  ;;  %3814 = vmatpush1.bf16.msra.mxu0 %v5234_v40  ;;  %v5311_v40 = vld [vmem:[#allocation5 + $0xf6c] ss:$16 sps:$4 sm:$0xff]  }
 0x1ff   :  { %3855 = vmatpush1.bf16.msra.mxu1 %v5237_v18  ;;  %v3521_v46 = vpop.f32.mrf.mxu0  ;;  %3815 = vmatprep.subr.bf16.mxu0 %v5242_v24  ;;  %v5306_v18 = vld [vmem:[#allocation5 + $0xd68] ss:$16 sps:$4 sm:$0xff]   ;;  %v5317_v41 = vld [vmem:[#allocation5 + $0xf4c] ss:$16 sps:$4 sm:$0xff]  }
 0x200   :  { %v3562_v48 = vpop.f32.mrf.mxu1  ;;  %3856 = vmatprep.subr.bf16.mxu1 %v5245_v25  ;;  %v5639_v52 = vadd.f32 %v3560_v42, %v3520_v43  ;;  %v3522_v54 = vadd.f32 %v3521_v46, %v5634_v61  ;;  %3845 = vmatprep.mubr.bf16.mxu0 %v5580_v44  ;;  %v5252_v61 = vld [vmem:[#allocation5 + $0xc88] ss:$16 sps:$4 sm:$0xff]   ;;  %v5314_v25 = vld [vmem:[#allocation5 + $0xd4c] ss:$16 sps:$4 sm:$0xff]  }
 0x201   :  { %3886 = vmatprep.mubr.bf16.mxu1 %v5584_v22  ;;  %v3523_v35 = vpop.f32.mrf.mxu0  ;;  %v5255_v44 = vld [vmem:[#allocation5 + $0xe88] ss:$16 sps:$4 sm:$0xff]   ;;  %v5260_v22 = vld [vmem:[#allocation5 + $0xc6c] ss:$16 sps:$4 sm:$0xff]  }
 0x202   :  { %v3564_v38 = vpop.f32.mrf.mxu1  ;;  %v5644_v29 = vadd.f32 %v3562_v48, %v3522_v54  ;;  %3816 = vmatpush1.bf16.msra.mxu0 %v5240_v23  ;;  %v5309_v24 = vld [vmem:[#allocation5 + $0xf68] ss:$16 sps:$4 sm:$0xff]   ;;  %v5320_v23 = vld [vmem:[#allocation5 + $0xd2c] ss:$16 sps:$4 sm:$0xff]  }
 0x203   :  { %3857 = vmatpush1.bf16.msra.mxu1 %v5243_v45  ;;  %v3524_v57 = vpop.f32.mrf.mxu0  ;;  %3817 = vmatprep.subr.bf16.mxu0 %v5248_v49  ;;  %v5312_v42 = vld [vmem:[#allocation5 + $0xd48] ss:$16 sps:$4 sm:$0xff]   ;;  %v5323_v45 = vld [vmem:[#allocation5 + $0xf2c] ss:$16 sps:$4 sm:$0xff]   ;;  %v5647_v38 = vsub.s32 2, %v5590_v53 }
 0x204   :  { %v3565_v58 = vpop.f32.mrf.mxu1  ;;  %3858 = vmatprep.subr.bf16.mxu1 %v5251_v50  ;;  %v5315_v43 = vld [vmem:[#allocation5 + $0xf48] ss:$16 sps:$4 sm:$0xff]   ;;  %v5326_v49 = vld [vmem:[#allocation5 + $0xd0c] ss:$16 sps:$4 sm:$0xff]  }
 0x205   :  { %v5318_v46 = vld [vmem:[#allocation5 + $0xd28] ss:$16 sps:$4 sm:$0xff]   ;;  %v5329_v50 = vld [vmem:[#allocation5 + $0xf0c] ss:$16 sps:$4 sm:$0xff]  }
 0x206   :  { %3818 = vmatpush1.bf16.msra.mxu0 %v5246_v55  ;;  %v5321_v48 = vld [vmem:[#allocation5 + $0xf28] ss:$16 sps:$4 sm:$0xff]   ;;  %v5650_v55 = vsub.s32 3, %v5590_v53 }
 0x207   :  { %3859 = vmatpush1.bf16.msra.mxu1 %v5249_v56  ;;  %3819 = vmatprep.subr.bf16.mxu0 %v5254_v60  ;;  %v5324_v54 = vld [vmem:[#allocation5 + $0xd08] ss:$16 sps:$4 sm:$0xff]   ;;  %v5334_v56 = vld [vmem:[#allocation7] sm:$0xf] }
 0x208   :  { %3860 = vmatprep.subr.bf16.mxu1 %v5257_v1  ;;  %v5327_v35 = vld [vmem:[#allocation5 + $0xf08] ss:$16 sps:$4 sm:$0xff]   ;;  %v614_v57 = vrot.slane %v5334_v56, %v5647_v38  ;;  %v618_v58 = vrot.slane %v5334_v56, %v5650_v55 }
 0x20a   :  { %3820 = vmatpush1.bf16.msra.mxu0 %v5252_v61 }
 0x20b   :  { %3861 = vmatpush1.bf16.msra.mxu1 %v5255_v44  ;;  %3821 = vmatprep.subr.bf16.mxu0 %v5260_v22 }
 0x20c   :  { %3862 = vmatprep.subr.bf16.mxu1 %v5263_v6 }
 0x20e   :  { %3822 = vmatpush1.bf16.msra.mxu0 %v5258_v7 }
 0x20f   :  { %3863 = vmatpush1.bf16.msra.mxu1 %v5261_v2  ;;  %3823 = vmatprep.subr.bf16.mxu0 %v5266_v3 }
 0x210   :  { %3864 = vmatprep.subr.bf16.mxu1 %v5269_v4 }
 0x212   :  { %3824 = vmatpush1.bf16.msra.mxu0 %v5264_v5 }
 0x213   :  { %3865 = vmatpush1.bf16.msra.mxu1 %v5267_v8  ;;  %3825 = vmatprep.subr.bf16.mxu0 %v5272_v9 }
 0x214   :  { %3866 = vmatprep.subr.bf16.mxu1 %v5275_v26 }
 0x216   :  { %3826 = vmatpush1.bf16.msra.mxu0 %v5270_v36 }
 0x217   :  { %3867 = vmatpush1.bf16.msra.mxu1 %v5273_v37  ;;  %3827 = vmatprep.subr.bf16.mxu0 %v5278_v10 }
 0x218   :  { %3868 = vmatprep.subr.bf16.mxu1 %v5281_v34 }
 0x21a   :  { %3828 = vmatpush1.bf16.msra.mxu0 %v5276_v39 }
 0x21b   :  { %3869 = vmatpush1.bf16.msra.mxu1 %v5279_v11  ;;  %3829 = vmatprep.subr.bf16.mxu0 %v5284_v12 }
 0x21c   :  { %3870 = vmatprep.subr.bf16.mxu1 %v5287_v13 }
 0x21e   :  { %3830 = vmatpush2.bf16.msra.mxu0 %v5282_v14 }
 0x21f   :  { %3871 = vmatpush2.bf16.msra.mxu1 %v5285_v15  ;;  %3831 = vmatprep.subr.bf16.mxu0 %v5290_v19 }
 0x220   :  { %3872 = vmatprep.subr.bf16.mxu1 %v5293_v20 }
 0x222   :  { %3832 = vmatpush2.bf16.msra.mxu0 %v5288_v21 }
 0x223   :  { %3873 = vmatpush2.bf16.msra.mxu1 %v5291_v27  ;;  %3833 = vmatprep.subr.bf16.mxu0 %v5296_v28 }
 0x224   :  { %3874 = vmatprep.subr.bf16.mxu1 %v5299_v30 }
 0x226   :  { %3834 = vmatpush2.bf16.msra.mxu0 %v5294_v16 }
 0x227   :  { %3875 = vmatpush2.bf16.msra.mxu1 %v5297_v17  ;;  %3835 = vmatprep.subr.bf16.mxu0 %v5302_v31 }
 0x228   :  { %3876 = vmatprep.subr.bf16.mxu1 %v5305_v32 }
 0x22a   :  { %3836 = vmatpush2.bf16.msra.mxu0 %v5300_v33 }
 0x22b   :  { %3877 = vmatpush2.bf16.msra.mxu1 %v5303_v47  ;;  %3837 = vmatprep.subr.bf16.mxu0 %v5308_v51 }
 0x22c   :  { %3878 = vmatprep.subr.bf16.mxu1 %v5311_v40 }
 0x22e   :  { %3838 = vmatpush2.bf16.msra.mxu0 %v5306_v18  ;;  %v3895_v18 = vadd.f32 %v5644_v29, %v5639_v52 }
 0x22f   :  { %3879 = vmatpush2.bf16.msra.mxu1 %v5309_v24  ;;  %3839 = vmatprep.subr.bf16.mxu0 %v5314_v25 }
 0x230   :  { %3880 = vmatprep.subr.bf16.mxu1 %v5317_v41 }
 0x232   :  { %3840 = vmatpush2.bf16.msra.mxu0 %v5312_v42 }
 0x233   :  { %3881 = vmatpush2.bf16.msra.mxu1 %v5315_v43  ;;  %3841 = vmatprep.subr.bf16.mxu0 %v5320_v23 }
 0x234   :  { %3882 = vmatprep.subr.bf16.mxu1 %v5323_v45 }
 0x236   :  { %3842 = vmatpush2.bf16.msra.mxu0 %v5318_v46 }
 0x237   :  { %3883 = vmatpush2.bf16.msra.mxu1 %v5321_v48  ;;  %3843 = vmatprep.subr.bf16.mxu0 %v5326_v49 }
 0x238   :  { %3884 = vmatprep.subr.bf16.mxu1 %v5329_v50 }
 0x23a   :  { %3844 = vmatpush2.bf16.msra.mxu0 %v5324_v54 }
 0x23b   :  { %3885 = vmatpush2.bf16.msra.mxu1 %v5327_v35 }
 0x23d   :  { %v3601_v60 = vpop.f32.mrf.mxu0  ;;  %3846 = vmatmul.mubr.bf16.vlgmr.msra.gmra.mxu0 %v5600_v63 }
 0x23e   :  { %v3642_v1 = vpop.f32.mrf.mxu1  ;;  %3887 = vmatmul.mubr.bf16.vlgmr.msra.gmra.mxu1 %v5604_v0  ;;  %v3602_v61 = vadd.f32 %v3601_v60, %v614_v57 }
 0x23f   :  { %v3603_v44 = vpop.f32.mrf.mxu0 }
 0x240   :  { %v3644_v22 = vpop.f32.mrf.mxu1  ;;  %v3643_v6 = vadd.f32 %v3642_v1, %v3602_v61  ;;  %v3604_v7 = vadd.f32 %v3603_v44, %v618_v58 }
 0x241   :  { %v3605_v53 = vpop.f32.mrf.mxu0 }
 0x242   :  { %v3646_v2 = vpop.f32.mrf.mxu1  ;;  %v3645_v3 = vadd.f32 %v3644_v22, %v3604_v7 }
 0x243   :  { %v3606_v4 = vpop.f32.mrf.mxu0 }
 0x244   :  { %v3647_v5 = vpop.f32.mrf.mxu1  ;;  %v3948_v4 = vld [vmem:[#allocation10] sm:$0xf] }
 0x27d   :  { %v3683_v8 = vpop.f32.mrf.mxu0 }
 0x27e   :  { %v3724_v9 = vpop.f32.mrf.mxu1  ;;  %v3684_v26 = vadd.f32 %v3683_v8, %v3643_v6 }
 0x27f   :  { %v3685_v36 = vpop.f32.mrf.mxu0 }
 0x280   :  { %v3726_v37 = vpop.f32.mrf.mxu1  ;;  %v3725_v10 = vadd.f32 %v3724_v9, %v3684_v26  ;;  %v3686_v34 = vadd.f32 %v3685_v36, %v3645_v3  ;;  %v3922_v3 = vld [vmem:[#allocation8] sm:$0xf]  ;;  %v3953_v26 = vrot.slane %v3948_v4, %v5593_v59  ;;  %v3957_v36 = vrot.slane %v3948_v4, %v5596_v62 }
 0x281   :  { %v3687_v63 = vpop.f32.mrf.mxu0  ;;  %v3935_v5 = vrot.slane %v3922_v3, %v5647_v38  ;;  %v3939_v8 = vrot.slane %v3922_v3, %v5650_v55 }
 0x282   :  { %v3728_v39 = vpop.f32.mrf.mxu1  ;;  %v3727_v0 = vadd.f32 %v3726_v37, %v3686_v34  ;;  %v3961_v37 = vrot.slane %v3948_v4, %v5647_v38 }
 0x283   :  { %v3688_v11 = vpop.f32.mrf.mxu0 }
 0x284   :  { %v3729_v12 = vpop.f32.mrf.mxu1 }
 0x2bd   :  { %v3765_v13 = vpop.f32.mrf.mxu0 }
 0x2be   :  { %v3806_v14 = vpop.f32.mrf.mxu1  ;;  %v3766_v30 = vadd.f32 %v3765_v13, %v3725_v10 }
 0x2bf   :  { %v3767_v15 = vpop.f32.mrf.mxu0 }
 0x2c0   :  { %v3808_v19 = vpop.f32.mrf.mxu1  ;;  %v3768_v16 = vadd.f32 %v3767_v15, %v3727_v0  ;;  %v3807_v17 = vadd.f32 %v3806_v14, %v3766_v30  ;;  %v3965_v0 = vrot.slane %v3948_v4, %v5650_v55 }
 0x2c1   :  { %v3769_v20 = vpop.f32.mrf.mxu0 }
 0x2c2   :  { %v3810_v21 = vpop.f32.mrf.mxu1  ;;  %v3809_v33 = vadd.f32 %v3808_v19, %v3768_v16 }
 0x2c3   :  { %v3770_v27 = vpop.f32.mrf.mxu0 }
 0x2c4   :  { %v3811_v28 = vpop.f32.mrf.mxu1 }
 0x2fd   :  { %v3847_v31 = vpop.f32.mrf.mxu0 }
 0x2fe   :  { %v3888_v32 = vpop.f32.mrf.mxu1  ;;  %v3848_v47 = vadd.f32 %v3847_v31, %v3807_v17 }
 0x2ff   :  { %v3849_v51 = vpop.f32.mrf.mxu0 }
 0x300   :  { %v3890_v40 = vpop.f32.mrf.mxu1  ;;  %v3889_v24 = vadd.f32 %v3888_v32, %v3848_v47  ;;  %v3850_v25 = vadd.f32 %v3849_v51, %v3809_v33 }
 0x301   :  { %v3851_v41 = vpop.f32.mrf.mxu0 }
 0x302   :  { %v3892_v42 = vpop.f32.mrf.mxu1  ;;  %v3891_v43 = vadd.f32 %v3890_v40, %v3850_v25  ;;  %v3896_v23 = vadd.f32 %v3895_v18, %v3889_v24 }
 0x303   :  { %v3852_v45 = vpop.f32.mrf.mxu0 }
 0x304   :  { %v3893_v46 = vpop.f32.mrf.mxu1  ;;  %v3897_v48 = vadd.f32 %v3896_v23, %v3891_v43 }
 0x306   :  { %3898 = vadd.xlane.f32.xlu0 %v3897_v48 }
 0x38f   :  { %v3899_v49 = vpop.xlane.xlu0 %3898 }
 0x390   :  { %v3901_v50 = vmul.f32 0.001953125, %v3899_v49 }
 0x392   :  { %v3902_v54 = vsub.f32 %v5639_v52, %v3901_v50  ;;  %v3903_v35 = vsub.f32 %v5644_v29, %v3901_v50  ;;  %v3904_v56 = vsub.f32 %v3889_v24, %v3901_v50  ;;  %v3905_v57 = vsub.f32 %v3891_v43, %v3901_v50 }
 0x393   :  { %v3927_v52 = vrot.slane %v3922_v3, %v5593_v59  ;;  %v3931_v29 = vrot.slane %v3922_v3, %v5596_v62 }
 0x394   :  { %v3906_v58 = vmul.f32 %v3902_v54, %v3902_v54  ;;  %v3907_v60 = vmul.f32 %v3903_v35, %v3903_v35  ;;  %v3908_v1 = vmul.f32 %v3904_v56, %v3904_v56  ;;  %v3909_v44 = vmul.f32 %v3905_v57, %v3905_v57 }
 0x396   :  { %v3910_v61 = vadd.f32 %v3907_v60, %v3906_v58 }
 0x398   :  { %v3911_v22 = vadd.f32 %v3910_v61, %v3908_v1 }
 0x39a   :  { %v3912_v6 = vadd.f32 %v3911_v22, %v3909_v44 }
 0x39c   :  { %3913 = vadd.xlane.f32.xlu0 %v3912_v6 }
 0x425   :  { %v3914_v7 = vpop.xlane.xlu0 %3913 }
 0x426   :  { %v3915_v53 = vmul.f32 0.001953125, %v3914_v7 }
 0x428   :  { %v3916_v2 = vadd.f32 1e-05, %v3915_v53 }
 0x42a   :  { %5330 = vrsqrt.f32 %v3916_v2 }
 0x437   :  { %v5331_v9 = vpop.eup %5330 }
 0x438   :  { %v3918_v10 = vmul.f32 %v5331_v9, %v3902_v54  ;;  %v3919_v34 = vmul.f32 %v5331_v9, %v3903_v35  ;;  %v3920_v63 = vmul.f32 %v5331_v9, %v3904_v56  ;;  %v3921_v39 = vmul.f32 %v5331_v9, %v3905_v57 }
 0x43a   :  { %v3944_v11 = vmul.f32 %v3927_v52, %v3918_v10  ;;  %v3945_v12 = vmul.f32 %v3931_v29, %v3919_v34  ;;  %v3946_v13 = vmul.f32 %v3935_v5, %v3920_v63  ;;  %v3947_v14 = vmul.f32 %v3939_v8, %v3921_v39 }
 0x43c   :  { %v3970_v15 = vadd.f32 %v3953_v26, %v3944_v11  ;;  %v3971_v19 = vadd.f32 %v3957_v36, %v3945_v12  ;;  %v3972_v20 = vadd.f32 %v3961_v37, %v3946_v13  ;;  %v3973_v21 = vadd.f32 %v3965_v0, %v3947_v14 }
 0x43e   :  { %v3974_v27 = vmul.f32 %v3970_v15, %v3970_v15  ;;  %v3975_v59 = vmul.f32 %v3971_v19, %v3971_v19  ;;  %v3976_v28 = vmul.f32 %v3972_v20, %v3972_v20  ;;  %v3977_v30 = vmul.f32 %v3973_v21, %v3973_v21 }
 0x440   :  { %v3978_v62 = vadd.f32 %v3975_v59, %v3974_v27 }
 0x442   :  { %v3979_v38 = vadd.f32 %v3978_v62, %v3976_v28 }
 0x444   :  { %v3980_v16 = vadd.f32 %v3979_v38, %v3977_v30 }
 0x446   :  { %3981 = vadd.xlane.f32.xlu1 %v3980_v16 }
 0x4cf   :  { %v3982_v17 = vpop.xlane.xlu1 %3981 }
 0x4d0   :  { %v3983_v31 = vmax.f32 %v3982_v17, 1e-24 }
 0x4d2   :  { %5332 = vrsqrt.f32 %v3983_v31 }
 0x4df   :  { %v5333_v55 = vpop.eup %5332 }
 0x4e0   :  { %v3985_v32 = vmul.f32 %v5333_v55, %v3970_v15  ;;  %v3986_v33 = vmul.f32 %v5333_v55, %v3971_v19  ;;  %v3987_v47 = vmul.f32 %v5333_v55, %v3972_v20  ;;  %v3988_v51 = vmul.f32 %v5333_v55, %v3973_v21 }
 0x4e2   :  { %3989 = vst [vmem:[#allocation11] sm:$0xff] %v3985_v32  ;;  %3990 = vst [vmem:[#allocation11 + $0x8] sm:$0xff] %v3986_v33 }
 0x4e3   :  { %3991 = vst [vmem:[#allocation11 + $0x10] sm:$0xff] %v3987_v47  ;;  %3992 = vst [vmem:[#allocation11 + $0x18] sm:$0xff] %v3988_v51 }
 0x4e4   :  { %5446 = shalt.err (!%p5443_p1)
}
 0x4e5   :  { %4002 = dma.vmem_to_hbm [thread:$0]  %s4000_s4, 512, %s5676_s5, [#allocation4]  }
 0x4e6   :  { %5461 = dma.done.wait [#allocation4], 512  }
 0x4e7   :  { %5462 = vsyncadd [#allocation4], 4294966784 }
 0x4e8   :  { %4006 = vsyncpa [#allocation3], 1 }
 0x4e9   :  { %4007 = vsyncpa [#allocation6], 1 }
 0x4ea   :  { %4008 = vsyncpa [#allocation9], 1 }
 0x4eb   :  { %4009 = vsyncpa [#allocation4], 1 }

</bundles_post_ra>
